<compile_context>
chip_gen: v7x
topology: tpu7x:2x2x1
jax: 0.10.0
libtpu: 0.0.40
codegen_flags: <defaults>
</compile_context>

<pallas_src>
import functools

import jax
import jax.numpy as jnp
from jax import lax
from jax.experimental import pallas as pl
from jax.experimental.pallas import tpu as pltpu

LANE = 128     # pad output/feature (lane) dims to a multiple of this
SUBLANE = 8    # row-offset granule inside the packed weight slab


def _round_up(n, m):
    return ((n + m - 1) // m) * m


def _mlp_fused_kernel(x_ref, w_ref, b_ref, o_ref, *,
                      din_r: int, hid_p: int, dout_p: int, layers_num: int):
    """Entire MLP forward; x, weight slab and bias slab are VMEM-resident.

    x_ref: (B, din_r)
    w_ref: (din_r + (layers_num+1)*hid_p, slab_cols)   row-concatenated weights
    b_ref: (layers_num + 2, slab_cols)                 one bias row per layer
    o_ref: (B, dout_p)
    """
    b_all = b_ref[...]  # tiny; load once, slice per layer (static indices)

    # Input layer: MXU matmul (f32 accumulation), bias + ReLU on the VPU in f32.
    w_in = w_ref[0:din_r, 0:hid_p]
    h = jnp.dot(x_ref[...], w_in, preferred_element_type=jnp.float32,
                precision=lax.Precision.HIGHEST)
    h = jnp.maximum(h + b_all[0:1, 0:hid_p], 0.0)

    # Hidden layers: layers_num is a compile-time constant -> fully unrolled.
    # (The (B, hid_p) f32 activation lives in VMEM/vregs as the compiler sees
    # fit; at large B it will not be register-resident, which is fine.)
    off = din_r
    for i in range(layers_num):
        w_i = w_ref[off:off + hid_p, 0:hid_p]
        h = jnp.dot(h, w_i, preferred_element_type=jnp.float32,
                    precision=lax.Precision.HIGHEST)
        h = jnp.maximum(h + b_all[i + 1:i + 2, 0:hid_p], 0.0)
        off += hid_p

    # Output layer: no activation; cast only on the lane-dense store.
    w_out = w_ref[off:off + hid_p, 0:dout_p]
    y = jnp.dot(h, w_out, preferred_element_type=jnp.float32,
                precision=lax.Precision.HIGHEST)
    o_ref[...] = (y + b_all[layers_num + 1:layers_num + 2, 0:dout_p]).astype(o_ref.dtype)


def init_params(key, input_dim, hidden_dim, output_dim, layers_num,
                dtype=jnp.float32):
    """torch.nn.Linear-style init: U(-1/sqrt(fan_in), +1/sqrt(fan_in)).

    Weights are stored (in_features, out_features) so each layer is y = x @ W + b.
    Returns a list of (w, b) pairs at their *logical* (unpadded) shapes.
    """
    dims = [input_dim, hidden_dim] + [hidden_dim] * layers_num + [output_dim]
    params = []
    for i in range(len(dims) - 1):
        fan_in, fan_out = dims[i], dims[i + 1]
        key, kw, kb = jax.random.split(key, 3)
        bound = 1.0 / float(fan_in) ** 0.5
        w = jax.random.uniform(kw, (fan_in, fan_out), dtype, -bound, bound)
        b = jax.random.uniform(kb, (1, fan_out), dtype, -bound, bound)
        params.append((w, b))
    return params


def pack_params(params, layers_num):
    """Pack all layers into one weight slab + one bias slab (done once).

    Rows of w_slab:  [w_in (din_r rows) | w_hid_0 | ... | w_hid_{L-1} | w_out],
    every block starting at an 8-row-aligned offset; lane dims zero-padded to a
    multiple of 128.  Zero-padding is exact: padded bias lanes are 0, so padded
    lanes stay 0 through bias/ReLU and contribute 0 to every dot product.
    """
    w_in, b_in = params[0]
    w_out, b_out = params[-1]
    hidden = params[1:-1]

    din, hid = w_in.shape
    dout = w_out.shape[1]
    din_r = _round_up(din, SUBLANE)          # K dim: sublane granule only
    hid_p = _round_up(hid, LANE)
    dout_p = _round_up(dout, LANE)
    slab_cols = max(hid_p, dout_p)
    n_rows = din_r + (layers_num + 1) * hid_p

    w_slab = jnp.zeros((n_rows, slab_cols), w_in.dtype)
    b_slab = jnp.zeros((layers_num + 2, slab_cols), w_in.dtype)

    w_slab = w_slab.at[0:din, 0:hid].set(w_in)
    b_slab = b_slab.at[0, 0:hid].set(b_in[0])
    off = din_r
    for i, (w, b) in enumerate(hidden):
        w_slab = w_slab.at[off:off + hid, 0:hid].set(w)
        b_slab = b_slab.at[i + 1, 0:hid].set(b[0])
        off += hid_p
    w_slab = w_slab.at[off:off + hid, 0:dout].set(w_out)
    b_slab = b_slab.at[layers_num + 1, 0:dout].set(b_out[0])
    return w_slab, b_slab


@functools.partial(jax.jit, static_argnames=("layers_num", "out_dim"))
def mlp_forward(x, w_slab, b_slab, *, layers_num: int, out_dim: int):
    """Fused MultiLayerLinear forward. x: (B, input_dim) -> (B, out_dim)."""
    B, din = x.shape
    din_r = _round_up(din, SUBLANE)
    dout_p = _round_up(out_dim, LANE)
    hid_p = (w_slab.shape[0] - din_r) // (layers_num + 1)
    itemsize = jnp.dtype(x.dtype).itemsize

    # Only pad x's feature dim if it is not already a sublane multiple.
    if din_r != din:
        x = jnp.zeros((B, din_r), x.dtype).at[:, :din].set(x)

    kernel = functools.partial(_mlp_fused_kernel, din_r=din_r, hid_p=hid_p,
                               dout_p=dout_p, layers_num=layers_num)

    flops = 2 * B * (din_r * hid_p + layers_num * hid_p * hid_p + hid_p * dout_p)
    bytes_accessed = (x.size + w_slab.size + b_slab.size + B * dout_p) * itemsize

    # Raise the scoped-VMEM limit only once the resident slabs need it
    # (defaults: 16 MiB v5e / 32 MiB v6e,v7x; v7x physical VMEM is 64 MiB).
    vmem_needed = 2 * int(bytes_accessed)          # rough double-buffer bound
    compiler_params = None
    if vmem_needed > 16 * 1024 * 1024:
        compiler_params = pltpu.CompilerParams(
            vmem_limit_bytes=min(vmem_needed + (4 << 20), 60 * 1024 * 1024))

    vmem = pl.BlockSpec(memory_space=pltpu.MemorySpace.VMEM)

    out_p = pl.pallas_call(
        kernel,
        out_shape=jax.ShapeDtypeStruct((B, dout_p), x.dtype),
        in_specs=[vmem, vmem, vmem],
        out_specs=vmem,
        cost_estimate=pl.CostEstimate(
            flops=int(flops), transcendentals=0,
            bytes_accessed=int(bytes_accessed)),
        compiler_params=compiler_params,
    )(x, w_slab, b_slab)

    # Lane-dense padded store inside the kernel; slice back to logical width.
    # TODO(synk): at large B, fuse this slice into the consumer instead.
    return out_p[:, :out_dim]


if __name__ == "__main__":
    # Small, module-consistent shapes.
    batch = 8
    input_dim = 32
    hidden_dim = 32
    output_dim = 16
    layers_num = 2

    key = jax.random.PRNGKey(0)
    key, kx = jax.random.split(key)
    x = jax.random.normal(kx, (batch, input_dim), jnp.float32)

    params = init_params(key, input_dim, hidden_dim, output_dim, layers_num)
    w_slab, b_slab = pack_params(params, layers_num)

    out = mlp_forward(x, w_slab, b_slab, layers_num=layers_num, out_dim=output_dim)
    out = jax.block_until_ready(out)

    # Pure-JAX reference of the same forward (unpadded params).
    ref = x
    for i, (w, b) in enumerate(params):
        ref = jnp.dot(ref, w, precision=lax.Precision.HIGHEST) + b
        if i < len(params) - 1:
            ref = jnp.maximum(ref, 0.0)

    assert out.shape == (batch, output_dim), out.shape
    assert jnp.allclose(out, ref, atol=1e-5, rtol=1e-5), float(
        jnp.max(jnp.abs(out - ref)))

    # Also exercise the layers_num == 0 path (no hidden rows in the slab).
    params0 = init_params(jax.random.PRNGKey(1), input_dim, hidden_dim,
                          output_dim, 0)
    w0, b0 = pack_params(params0, 0)
    out0 = jax.block_until_ready(
        mlp_forward(x, w0, b0, layers_num=0, out_dim=output_dim))
    ref0 = jnp.maximum(
        jnp.dot(x, params0[0][0], precision=lax.Precision.HIGHEST) + params0[0][1], 0.0)
    ref0 = jnp.dot(ref0, params0[1][0], precision=lax.Precision.HIGHEST) + params0[1][1]
    assert jnp.allclose(out0, ref0, atol=1e-5, rtol=1e-5)

    print("KERNEL_OK")
</pallas_src>

<mosaic_0001>
module attributes {stable_mosaic.version = 11 : i64} {
  func.func @_mlp_fused_kernel(%arg0: memref<8x32xf32, #tpu.memory_space<vmem>>, %arg1: memref<416x128xf32, #tpu.memory_space<vmem>>, %arg2: memref<4x128xf32, #tpu.memory_space<vmem>>, %arg3: memref<8x128xf32, #tpu.memory_space<vmem>>) attributes {dimension_semantics = [], scalar_prefetch = 0 : i64, scratch_operands = 0 : i64, tpu.core_type = #tpu.core_type<tc>} {
    %c0 = arith.constant 0 : index
    %c0_0 = arith.constant 0 : index
    %0 = vector.load %arg2[%c0, %c0_0] : memref<4x128xf32, #tpu.memory_space<vmem>>, vector<4x128xf32>
    %c0_1 = arith.constant 0 : index
    %c0_2 = arith.constant 0 : index
    %1 = vector.load %arg1[%c0_1, %c0_2] : memref<416x128xf32, #tpu.memory_space<vmem>>, vector<32x128xf32>
    %c0_3 = arith.constant 0 : index
    %c0_4 = arith.constant 0 : index
    %2 = vector.load %arg0[%c0_3, %c0_4] : memref<8x32xf32, #tpu.memory_space<vmem>>, vector<8x32xf32>
    %cst = arith.constant dense<0.000000e+00> : vector<8x128xf32>
    %3 = tpu.matmul %2, %1, %cst {dimension_numbers = #tpu.dot_dimension_numbers<[1], [0], [0], [1], [0, 0, 1, 1], [], []>, precision = #tpu.contract_precision<fp32>} : vector<8x32xf32>, vector<32x128xf32>, vector<8x128xf32> -> vector<8x128xf32>
    %4 = vector.extract_strided_slice %0 {offsets = [0, 0], sizes = [1, 128], strides = [1, 1]} : vector<4x128xf32> to vector<1x128xf32>
    %5 = vector.broadcast %4 : vector<1x128xf32> to vector<8x128xf32>
    %6 = arith.addf %3, %5 : vector<8x128xf32>
    %cst_5 = arith.constant 0.000000e+00 : f32
    %7 = vector.broadcast %cst_5 : f32 to vector<8x128xf32>
    %8 = arith.maximumf %6, %7 : vector<8x128xf32>
    %c32 = arith.constant 32 : index
    %c0_6 = arith.constant 0 : index
    %9 = vector.load %arg1[%c32, %c0_6] : memref<416x128xf32, #tpu.memory_space<vmem>>, vector<128x128xf32>
    %cst_7 = arith.constant dense<0.000000e+00> : vector<8x128xf32>
    %10 = tpu.matmul %8, %9, %cst_7 {dimension_numbers = #tpu.dot_dimension_numbers<[1], [0], [0], [1], [0, 0, 1, 1], [], []>, precision = #tpu.contract_precision<fp32>} : vector<8x128xf32>, vector<128x128xf32>, vector<8x128xf32> -> vector<8x128xf32>
    %11 = vector.extract_strided_slice %0 {offsets = [1, 0], sizes = [1, 128], strides = [1, 1]} : vector<4x128xf32> to vector<1x128xf32>
    %12 = vector.broadcast %11 : vector<1x128xf32> to vector<8x128xf32>
    %13 = arith.addf %10, %12 : vector<8x128xf32>
    %cst_8 = arith.constant 0.000000e+00 : f32
    %14 = vector.broadcast %cst_8 : f32 to vector<8x128xf32>
    %15 = arith.maximumf %13, %14 : vector<8x128xf32>
    %c160 = arith.constant 160 : index
    %c0_9 = arith.constant 0 : index
    %16 = vector.load %arg1[%c160, %c0_9] : memref<416x128xf32, #tpu.memory_space<vmem>>, vector<128x128xf32>
    %cst_10 = arith.constant dense<0.000000e+00> : vector<8x128xf32>
    %17 = tpu.matmul %15, %16, %cst_10 {dimension_numbers = #tpu.dot_dimension_numbers<[1], [0], [0], [1], [0, 0, 1, 1], [], []>, precision = #tpu.contract_precision<fp32>} : vector<8x128xf32>, vector<128x128xf32>, vector<8x128xf32> -> vector<8x128xf32>
    %18 = vector.extract_strided_slice %0 {offsets = [2, 0], sizes = [1, 128], strides = [1, 1]} : vector<4x128xf32> to vector<1x128xf32>
    %19 = vector.broadcast %18 : vector<1x128xf32> to vector<8x128xf32>
    %20 = arith.addf %17, %19 : vector<8x128xf32>
    %cst_11 = arith.constant 0.000000e+00 : f32
    %21 = vector.broadcast %cst_11 : f32 to vector<8x128xf32>
    %22 = arith.maximumf %20, %21 : vector<8x128xf32>
    %c288 = arith.constant 288 : index
    %c0_12 = arith.constant 0 : index
    %23 = vector.load %arg1[%c288, %c0_12] : memref<416x128xf32, #tpu.memory_space<vmem>>, vector<128x128xf32>
    %cst_13 = arith.constant dense<0.000000e+00> : vector<8x128xf32>
    %24 = tpu.matmul %22, %23, %cst_13 {dimension_numbers = #tpu.dot_dimension_numbers<[1], [0], [0], [1], [0, 0, 1, 1], [], []>, precision = #tpu.contract_precision<fp32>} : vector<8x128xf32>, vector<128x128xf32>, vector<8x128xf32> -> vector<8x128xf32>
    %25 = vector.extract_strided_slice %0 {offsets = [3, 0], sizes = [1, 128], strides = [1, 1]} : vector<4x128xf32> to vector<1x128xf32>
    %26 = vector.broadcast %25 : vector<1x128xf32> to vector<8x128xf32>
    %27 = arith.addf %24, %26 : vector<8x128xf32>
    %c0_14 = arith.constant 0 : index
    %c0_15 = arith.constant 0 : index
    %28 = vector.load %arg3[%c0_14, %c0_15] : memref<8x128xf32, #tpu.memory_space<vmem>>, vector<8x128xf32>
    tpu.vector_store %arg3[%c0_14, %c0_15], %27 {strides = array<i32>} : memref<8x128xf32, #tpu.memory_space<vmem>>, vector<8x128xf32>,
    return
  }
}

</mosaic_0001>

<bundles_post_ra>
// kernel: mlp_forward.1
= control target key start
LH: loop header
LB: loop body
LE: loop exit
PB: predicated region body
PF: predicated region fallthrough
CT: control target
= control target key end

     0   :  { %8 = vsyncpa [#allocation3], 0  ;;  %s5197_s0 = inlined_call_operand.hbm [shape: f32[8,32], index: 0, kind: input, shape index: {}]   ;;  %s5198_s1 = inlined_call_operand.hbm [shape: f32[416,128], index: 1, kind: input, shape index: {}]   ;;  %s5199_s2 = inlined_call_operand.vmem [shape: f32[4,128], index: 2, kind: input, shape index: {}]   ;;  %s5200_s3 = inlined_call_operand.hbm [shape: f32[8,128], index: 3, kind: output, shape index: {}]  }
   0x1   :  { %9 = vsyncpa [#allocation6], 0 }
   0x2   :  { %10 = vsyncpa [#allocation4], 0  ;;  %s4167_s12 = smov [#allocation2]   ;;  %s4168_s14 = smov [#allocation5]  }
   0x3   :  { %s17_s13 = sshll.u32 %s4167_s12, 4  ;;  %s26_s15 = sshll.u32 %s4168_s14, 4  ;;  %s18_s13 = int_to_ptr.vmem [resolvable:$true] %s17_s13  ;;  %s4195_s15 = int_to_ptr.vmem [resolvable:$true] %s26_s15 }
   0x4   :  { %s4095_s18 = scalar_lea.hbm %s5197_s0, 128 }
   0x5   :  { %p4096_p0 = scmp.ne.s32.totalorder %s5197_s0, %s4095_s18  ;;  %p4099_p1 = scmp.lt.u32.totalorder %s4095_s18, %s5197_s0 }
   0x7   :  { %p4101_p2 = pnand %p4099_p1, %p4096_p0 }
   0x9   :  { %4104 = shalt.err (!%p4101_p2)
}
   0xa   :  { %s4105_s23 = scalar_lea.vmem %s18_s13, 128  ;;  %p4110_p4 = scmp.lt.s32.totalorder %s18_s13, %s18_s13 }
   0xb   :  { %p4106_p3 = scmp.ne.s32.totalorder %s18_s13, %s4105_s23  ;;  %p4111_p5 = scmp.lt.s32.totalorder %s4105_s23, %s4105_s23 }
   0xd   :  { %p4112_p6 = por %p4111_p5, %p4110_p4 }
   0xf   :  { %p4113_p7 = pnand %p4112_p6, %p4106_p3 }
  0x11   :  { %4116 = shalt.err (!%p4113_p7)
}
  0x12   :  { %20 = dma.hbm_to_vmem [thread:$0]  %s5197_s0, 128, %s18_s13, [#allocation3]  }
  0x13   :  { %s4117_s28 = scalar_lea.hbm %s5198_s1, 6656 }
  0x14   :  { %p4118_p8 = scmp.ne.s32.totalorder %s5198_s1, %s4117_s28  ;;  %p4121_p9 = scmp.lt.u32.totalorder %s4117_s28, %s5198_s1 }
  0x16   :  { %p4123_p10 = pnand %p4121_p9, %p4118_p8 }
  0x18   :  { %4126 = shalt.err (!%p4123_p10)
}
  0x19   :  { %s4127_s6 = scalar_lea.vmem %s4195_s15, 6656  ;;  %p4132_p12 = scmp.lt.s32.totalorder %s4195_s15, %s4195_s15 }
  0x1a   :  { %p4128_p11 = scmp.ne.s32.totalorder %s4195_s15, %s4127_s6  ;;  %p4133_p13 = scmp.lt.s32.totalorder %s4127_s6, %s4127_s6 }
  0x1c   :  { %p4134_p0 = por %p4133_p13, %p4132_p12 }
  0x1e   :  { %p4135_p1 = pnand %p4134_p0, %p4128_p11 }
  0x20   :  { %4138 = shalt.err (!%p4135_p1)
}
  0x21   :  { %s4169_s0 = smov 128   ;;  %s4170_s7 = smov 8  }
  0x22   :  { %32 = dma.hbm_to_vmem [thread:$0]  %s5198_s1, 6656, %s4195_s15, [#allocation6], %s4169_s0, %s4169_s0, %s4170_s7  }
  0x23   :  { %4161 = dma.done.wait [#allocation3], 128  }
  0x24   :  { %4162 = vsyncadd [#allocation3], 4294967168 }
  0x25   :  { %4163 = dma.done.wait [#allocation6], 6656  }
  0x26   :  { %4164 = vsyncadd [#allocation6], 4294960640  ;;  %v4171_v0 = vmov 0.0|0.0   ;;  %vm4172_vm0 = vmmov 0   ;;  %v4173_v1 = vmov 0.0   ;;  %vm51_vm1 = vcmask 261120  }
  0x27   :  { %3575 = vmatprep.subr.bf16.mxu0 %v4171_v0  ;;  %2887 = vmatprep.mubr.msk.f32.mxu0 %vm4172_vm0, %v4173_v1  ;;  %v42_v2 = vld [vmem:[#allocation5] sm:$0xff]  ;;  %v43_v3 = vld [vmem:[#allocation5 + $0x8] sm:$0xff]  ;;  %v44_v4 = vld [vmem:[#allocation5 + $0x10] sm:$0xff] }
  0x28   :  { %3659 = vmatprep.subr.bf16.mxu1 %v4171_v0  ;;  %3047 = vmatprep.mubr.msk.f32.mxu1 %vm4172_vm0, %v4173_v1  ;;  %v56_v5 = vand.u32 4294901760, %v42_v2  ;;  %v59_v6 = vand.u32 4294901760, %v43_v3  ;;  %v45_v7 = vld [vmem:[#allocation5 + $0x18] sm:$0xff]  ;;  %v62_v8 = vand.u32 4294901760, %v44_v4  ;;  %v4232_v10 = vld [vmem:[#allocation5 + $0x20] sm:$0xff]  ;;  %v4234_v13 = vld [vmem:[#allocation5 + $0x28] sm:$0xff] }
  0x29   :  { %v46_v9 = vld [vmem:[#allocation2] sm:$0xff]  ;;  %v65_v11 = vand.u32 4294901760, %v45_v7  ;;  %v562_v14 = vand.u32 4294901760, %v4232_v10  ;;  %v565_v25 = vand.u32 4294901760, %v4234_v13  ;;  %v4275_v32 = vld [vmem:[#allocation5 + $0x30] sm:$0xff]  ;;  %v4295_v42 = vld [vmem:[#allocation5 + $0x40] sm:$0xff] }
  0x2a   :  { %v53_v12 = vsel %vm51_vm1, %v46_v9, 0  ;;  %v4237_v15 = vpack.c.bf16 %v59_v6, %v56_v5  ;;  %v4239_v16 = vsub.f32 %v42_v2, %v56_v5  ;;  %v4241_v17 = vsub.f32 %v43_v3, %v59_v6  ;;  %v4277_v33 = vld [vmem:[#allocation5 + $0x38] sm:$0xff]  ;;  %v4297_v43 = vld [vmem:[#allocation5 + $0x48] sm:$0xff]  ;;  %v4299_v44 = vld [vmem:[#allocation5 + $0x50] sm:$0xff] }
  0x2b   :  { %v4243_v18 = vsub.f32 %v44_v4, %v62_v8  ;;  %v4245_v19 = vpack.c.bf16 %v65_v11, %v62_v8  ;;  %v4247_v20 = vsub.f32 %v45_v7, %v65_v11  ;;  %v4249_v21 = vand.u32 4294901760, %v53_v12  ;;  %v4303_v49 = vld [vmem:[#allocation5 + $0x58] sm:$0xff]  ;;  %v4318_v56 = vld [vmem:[#allocation5 + $0x60] sm:$0xff]  ;;  %v4324_v59 = vld [vmem:[#allocation5 + $0x68] sm:$0xff] }
  0x2c   :  { %3577 = vmatpush3.bf16.msra.mxu0 %v4237_v15  ;;  %v137_v22 = vand.u32 4294901760, %v4239_v16  ;;  %v144_v23 = vand.u32 4294901760, %v4241_v17  ;;  %v4273_v31 = vsub.f32 %v4232_v10, %v562_v14  ;;  %v4287_v38 = vsub.f32 %v4234_v13, %v565_v25  ;;  %v4353_v6 = vld [vmem:[#allocation5 + $0x70] sm:$0xff]  ;;  %v4356_v7 = vld [vmem:[#allocation5 + $0x78] sm:$0xff] }
  0x2d   :  { %v151_v24 = vand.u32 4294901760, %v4243_v18  ;;  %3578 = vmatprep.subr.bf16.mxu0 %v4171_v0  ;;  %v4258_v26 = vsub.f32 %v53_v12, %v4249_v21  ;;  %v158_v27 = vand.u32 4294901760, %v4247_v20  ;;  %v568_v40 = vand.u32 4294901760, %v4275_v32 }
  0x2e   :  { %v138_v28 = vsub.f32 %v4239_v16, %v137_v22  ;;  %v145_v29 = vsub.f32 %v4241_v17, %v144_v23  ;;  %v571_v41 = vand.u32 4294901760, %v4277_v33  ;;  %v3660_v48 = vpack.c.bf16 %v4287_v38, %v4273_v31 }
  0x2f   :  { %v152_v30 = vsub.f32 %v4243_v18, %v151_v24  ;;  %v126_v34 = vand.u32 4294901760, %v4258_v26  ;;  %v159_v35 = vsub.f32 %v4247_v20, %v158_v27  ;;  %v4308_v51 = vsub.f32 %v4275_v32, %v568_v40 }
  0x30   :  { %3580 = vmatpush3.bf16.msra.mxu0 %v4245_v19  ;;  %v139_v36 = vand.u32 4294901760, %v138_v28  ;;  %v146_v37 = vand.u32 4294901760, %v145_v29  ;;  %v4313_v52 = vsub.f32 %v4277_v33, %v571_v41  ;;  %3661 = vmatpush3.bf16.msra.mxu1 %v3660_v48  ;;  %v574_v53 = vand.u32 4294901760, %v4295_v42 }
  0x31   :  { %v127_v39 = vsub.f32 %v4258_v26, %v126_v34  ;;  %3581 = vmatprep.subr.bf16.mxu0 %v4171_v0  ;;  %v153_v46 = vand.u32 4294901760, %v152_v30  ;;  %v160_v47 = vand.u32 4294901760, %v159_v35  ;;  %v577_v54 = vand.u32 4294901760, %v4297_v43  ;;  %3662 = vmatprep.subr.bf16.mxu1 %v4171_v0 }
  0x32   :  { %v3582_v45 = vpack.c.bf16 %v146_v37, %v139_v36  ;;  %v580_v55 = vand.u32 4294901760, %v4299_v44  ;;  %v3663_v57 = vpack.c.bf16 %v4313_v52, %v4308_v51  ;;  %v583_v58 = vand.u32 4294901760, %v4303_v49 }
  0x33   :  { %v128_v50 = vand.u32 4294901760, %v127_v39  ;;  %v3585_v60 = vpack.c.bf16 %v160_v47, %v153_v46  ;;  %v4331_v61 = vsub.f32 %v4295_v42, %v574_v53  ;;  %v4336_v62 = vsub.f32 %v4297_v43, %v577_v54 }
  0x34   :  { %v586_v63 = vand.u32 4294901760, %v4318_v56  ;;  %3664 = vmatpush3.bf16.msra.mxu1 %v3663_v57  ;;  %v4345_v3 = vsub.f32 %v4299_v44, %v580_v55  ;;  %v4350_v4 = vsub.f32 %v4303_v49, %v583_v58  ;;  %v589_v5 = vand.u32 4294901760, %v4324_v59 }
  0x35   :  { %2888 = vmatmul.mubr.f32.vlgmr.msra.gmra.mrb[0].mxu0 %v128_v50  ;;  %v3666_v2 = vpack.c.bf16 %v4336_v62, %v4331_v61  ;;  %3665 = vmatprep.subr.bf16.mxu1 %v4171_v0  ;;  %v3588_v8 = vpack.c.bf16 %v4241_v17, %v4239_v16  ;;  %v592_v9 = vand.u32 4294901760, %v4353_v6  ;;  %v595_v29 = vand.u32 4294901760, %v4356_v7  ;;  %v553_v17 = vld [vmem:[#allocation5 + $0x80] sm:$0xff] }
  0x36   :  { %3583 = vmatpush3.bf16.msra.mxu0 %v3582_v45  ;;  %2898 = vmatprep.mubr.msk.f32.mxu0 %vm4172_vm0, %v4173_v1  ;;  %v3669_v11 = vpack.c.bf16 %v4350_v4, %v4345_v3  ;;  %v4367_v12 = vsub.f32 %v4318_v56, %v586_v63  ;;  %v4372_v28 = vsub.f32 %v4324_v59, %v589_v5 }
  0x37   :  { %3584 = vmatprep.subr.bf16.mxu0 %v4171_v0  ;;  %v3591_v30 = vpack.c.bf16 %v4247_v20, %v4243_v18  ;;  %v4387_v36 = vsub.f32 %v4353_v6, %v592_v9  ;;  %v4392_v37 = vsub.f32 %v4356_v7, %v595_v29  ;;  %v3600_v45 = vpack.c.bf16 %v144_v23, %v137_v22  ;;  %v554_v18 = vld [vmem:[#allocation5 + $0x88] sm:$0xff]  ;;  %v555_v23 = vld [vmem:[#allocation5 + $0x90] sm:$0xff] }
  0x38   :  { %3667 = vmatpush3.bf16.msra.mxu1 %v3666_v2  ;;  %v3672_v35 = vpack.c.bf16 %v4372_v28, %v4367_v12  ;;  %v3603_v46 = vpack.c.bf16 %v158_v27, %v151_v24  ;;  %v4431_v16 = vpack.c.bf16 %v565_v25, %v562_v14  ;;  %v4450_v10 = vpack.c.bf16 %v577_v54, %v574_v53  ;;  %v556_v24 = vld [vmem:[#allocation5 + $0x98] sm:$0xff] }
  0x39   :  { %3668 = vmatprep.subr.bf16.mxu1 %v4171_v0  ;;  %v3675_v39 = vpack.c.bf16 %v4392_v37, %v4387_v36  ;;  %v4458_v13 = vpack.c.bf16 %v583_v58, %v580_v55  ;;  %v4466_v14 = vpack.c.bf16 %v589_v5, %v586_v63  ;;  %v601_v20 = vand.u32 4294901760, %v554_v18 }
  0x3a   :  { %3586 = vmatpush3.bf16.msra.mxu0 %v3585_v60  ;;  %v607_v27 = vand.u32 4294901760, %v556_v24  ;;  %v4475_v32 = vpack.c.bf16 %v595_v29, %v592_v9  ;;  %v47_v5 = vlaneseq  ;;  %v662_v29 = vand.u32 4294901760, %v4287_v38 }
  0x3b   :  { %3587 = vmatprep.subr.bf16.mxu0 %v4171_v0  ;;  %v745_v22 = vsub.f32 %v554_v18, %v601_v20  ;;  %v669_v18 = vand.u32 4294901760, %v4308_v51 }
  0x3c   :  { %3670 = vmatpush3.bf16.msra.mxu1 %v3669_v11  ;;  %v4497_v6 = vshrl.u32 %v47_v5, 7  ;;  %v655_v11 = vand.u32 4294901760, %v4273_v31  ;;  %v711_v5 = vand.u32 4294901760, %v4367_v12 }
  0x3d   :  { %2899 = vmatmul.mubr.f32.vlgmr.msra.gmra.mrb[0].mxu0 %v4249_v21  ;;  %3671 = vmatprep.subr.bf16.mxu1 %v4171_v0  ;;  %v746_v44 = vand.u32 4294901760, %v745_v22 }
  0x3e   :  { %3589 = vmatpush3.bf16.msra.mxu0 %v3588_v8  ;;  %2909 = vmatprep.mubr.msk.f32.mxu0 %vm4172_vm0, %v4173_v1  ;;  %v49_v7 = vsub.s32 0, %v4497_v6  ;;  %v4503_v8 = vld [vmem:[%s5199_s2] sm:$0xf] }
  0x3f   :  { %3590 = vmatprep.subr.bf16.mxu0 %v4171_v0  ;;  %v747_v48 = vsub.f32 %v745_v22, %v746_v44 }
  0x40   :  { %3673 = vmatpush3.bf16.msra.mxu1 %v3672_v35  ;;  %v50_v9 = vrot.slane %v4503_v8, %v49_v7  ;;  %v718_v7 = vand.u32 4294901760, %v4372_v28 }
  0x41   :  { %3674 = vmatprep.subr.bf16.mxu1 %v4171_v0  ;;  %v748_v50 = vand.u32 4294901760, %v747_v48 }
  0x42   :  { %3592 = vmatpush3.bf16.msra.mxu0 %v3591_v30 }
  0x43   :  { %3593 = vmatprep.subr.bf16.mxu0 %v4171_v0 }
  0x44   :  { %3676 = vmatpush3.bf16.msra.mxu1 %v3675_v39 }
  0x45   :  { %2910 = vmatmul.mubr.f32.vlgmr.msra.gmra.mrb[0].mxu0 %v4258_v26  ;;  %3677 = vmatprep.subr.bf16.mxu1 %v4171_v0  ;;  %v604_v26 = vand.u32 4294901760, %v555_v23 }
  0x46   :  { %3595 = vmatpush3.bf16.msra.mxu0 %v4237_v15  ;;  %2920 = vmatprep.mubr.msk.f32.mxu0 %vm4172_vm0, %v4173_v1 }
  0x47   :  { %3596 = vmatprep.subr.bf16.mxu0 %v4171_v0  ;;  %v752_v33 = vsub.f32 %v555_v23, %v604_v26  ;;  %v4485_v42 = vpack.c.bf16 %v607_v27, %v604_v26  ;;  %v690_v23 = vand.u32 4294901760, %v4336_v62  ;;  %v670_v26 = vsub.f32 %v4308_v51, %v669_v18 }
  0x48   :  { %v3720_v51 = vpack.c.bf16 %v718_v7, %v711_v5 }
  0x49   :  { %v753_v53 = vand.u32 4294901760, %v752_v33 }
  0x4a   :  { %3598 = vmatpush3.bf16.msra.mxu0 %v4245_v19 }
  0x4b   :  { %3599 = vmatprep.subr.bf16.mxu0 %v4171_v0  ;;  %v754_v56 = vsub.f32 %v752_v33, %v753_v53 }
  0x4d   :  { %2921 = vmatmul.mubr.f32.vlgmr.msra.gmra.mrb[0].mxu0 %v126_v34  ;;  %v759_v34 = vsub.f32 %v556_v24, %v607_v27  ;;  %v755_v58 = vand.u32 4294901760, %v754_v56 }
  0x4e   :  { %3601 = vmatpush3.bf16.msra.mxu0 %v3600_v45  ;;  %2931 = vmatprep.mubr.msk.f32.mxu0 %vm4172_vm0, %v4173_v1 }
  0x4f   :  { %3602 = vmatprep.subr.bf16.mxu0 %v4171_v0  ;;  %v760_v54 = vand.u32 4294901760, %v759_v34 }
  0x51   :  { %v761_v57 = vsub.f32 %v759_v34, %v760_v54  ;;  %v4495_v2 = vpack.c.bf16 %v760_v54, %v753_v53 }
  0x52   :  { %3604 = vmatpush3.bf16.msra.mxu0 %v3603_v46  ;;  %v656_v46 = vsub.f32 %v4273_v31, %v655_v11 }
  0x53   :  { %3605 = vmatprep.subr.bf16.mxu0 %v4171_v0  ;;  %v762_v59 = vand.u32 4294901760, %v761_v57 }
  0x54   :  { %v657_v24 = vand.u32 4294901760, %v656_v46  ;;  %v725_v46 = vand.u32 4294901760, %v4387_v36 }
  0x55   :  { %2932 = vmatmul.mubr.f32.vlgmr.msra.gmra.mrb[0].mxu0 %v4249_v21  ;;  %v4491_v60 = vpack.c.bf16 %v762_v59, %v755_v58 }
  0x56   :  { %3607 = vmatpush3.bf16.msra.mxu0 %v4237_v15  ;;  %2942 = vmatprep.mubr.msk.f32.mxu0 %vm4172_vm0, %v4173_v1  ;;  %v4440_v15 = vpack.c.bf16 %v571_v41, %v568_v40  ;;  %v3681_v40 = vpack.c.bf16 %v759_v34, %v752_v33 }
  0x57   :  { %3608 = vmatprep.subr.bf16.mxu0 %v4171_v0 }
  0x5a   :  { %3610 = vmatpush3.bf16.msra.mxu0 %v4245_v19  ;;  %v598_v19 = vand.u32 4294901760, %v553_v17 }
  0x5b   :  { %3611 = vmatprep.subr.bf16.mxu0 %v4171_v0 }
  0x5c   :  { %v4480_v41 = vpack.c.bf16 %v601_v20, %v598_v19 }
  0x5d   :  { %2943 = vmatmul.mubr.f32.vlgmr.msra.gmra.mrb[0].mxu0 %v4249_v21  ;;  %v738_v21 = vsub.f32 %v553_v17, %v598_v19  ;;  %v663_v17 = vsub.f32 %v4287_v38, %v662_v29  ;;  %v676_v19 = vand.u32 4294901760, %v4313_v52 }
  0x5e   :  { %3613 = vmatpush3.bf16.msra.mxu0 %v4431_v16  ;;  %2977 = vmatprep.mubr.msk.f32.mxu0 %vm4172_vm0, %v4173_v1 }
  0x5f   :  { %3614 = vmatprep.subr.bf16.mxu0 %v4171_v0  ;;  %v3678_v25 = vpack.c.bf16 %v745_v22, %v738_v21  ;;  %v739_v43 = vand.u32 4294901760, %v738_v21  ;;  %v677_v27 = vsub.f32 %v4313_v52, %v676_v19 }
  0x61   :  { %3679 = vmatpush3.bf16.msra.mxu1 %v3678_v25  ;;  %v740_v47 = vsub.f32 %v738_v21, %v739_v43  ;;  %v4493_v63 = vpack.c.bf16 %v746_v44, %v739_v43  ;;  %v683_v21 = vand.u32 4294901760, %v4331_v61  ;;  %v664_v25 = vand.u32 4294901760, %v663_v17 }
  0x62   :  { %3616 = vmatpush3.bf16.msra.mxu0 %v4440_v15  ;;  %3680 = vmatprep.subr.bf16.mxu1 %v4171_v0  ;;  %v691_v43 = vsub.f32 %v4336_v62, %v690_v23  ;;  %v697_v44 = vand.u32 4294901760, %v4345_v3  ;;  %v732_v17 = vand.u32 4294901760, %v4392_v37  ;;  %v1204_v62 = vld [vmem:[#allocation5 + $0xa8] sm:$0xff] }
  0x63   :  { %3617 = vmatprep.subr.bf16.mxu0 %v4171_v0  ;;  %v741_v49 = vand.u32 4294901760, %v740_v47  ;;  %v684_v34 = vsub.f32 %v4331_v61, %v683_v21  ;;  %v704_v47 = vand.u32 4294901760, %v4350_v4  ;;  %v3636_v48 = vpack.c.bf16 %v664_v25, %v657_v24  ;;  %v1203_v61 = vld [vmem:[#allocation5 + $0xa0] sm:$0xff] }
  0x64   :  { %v692_v56 = vand.u32 4294901760, %v691_v43  ;;  %v698_v57 = vsub.f32 %v4345_v3, %v697_v44  ;;  %v3711_v43 = vpack.c.bf16 %v676_v19, %v669_v18  ;;  %v3714_v31 = vpack.c.bf16 %v690_v23, %v683_v21  ;;  %v1205_v3 = vld [vmem:[#allocation5 + $0xb0] sm:$0xff]  ;;  %v1212_v19 = vld [vmem:[#allocation5 + $0xe8] sm:$0xff] }
  0x65   :  { %3682 = vmatpush3.bf16.msra.mxu1 %v3681_v40  ;;  %v4489_v55 = vpack.c.bf16 %v748_v50, %v741_v49  ;;  %v671_v49 = vand.u32 4294901760, %v670_v26  ;;  %v678_v50 = vand.u32 4294901760, %v677_v27  ;;  %v685_v54 = vand.u32 4294901760, %v684_v34 }
  0x66   :  { %3619 = vmatpush3.bf16.msra.mxu0 %v4450_v10  ;;  %3683 = vmatprep.subr.bf16.mxu1 %v4171_v0  ;;  %v705_v58 = vsub.f32 %v4350_v4, %v704_v47  ;;  %v726_v27 = vsub.f32 %v4387_v36, %v725_v46  ;;  %v3717_v38 = vpack.c.bf16 %v704_v47, %v697_v44  ;;  %v1224_v4 = vand.u32 4294901760, %v1203_v61 }
  0x67   :  { %3620 = vmatprep.subr.bf16.mxu0 %v4171_v0  ;;  %v3639_v59 = vpack.c.bf16 %v678_v50, %v671_v49  ;;  %v3723_v52 = vpack.c.bf16 %v732_v17, %v725_v46 }
  0x68   :  { %v727_v34 = vand.u32 4294901760, %v726_v27 }
  0x6a   :  { %3622 = vmatpush3.bf16.msra.mxu0 %v4458_v13 }
  0x6b   :  { %3623 = vmatprep.subr.bf16.mxu0 %v4171_v0 }
  0x6e   :  { %3625 = vmatpush3.bf16.msra.mxu0 %v4466_v14 }
  0x6f   :  { %3626 = vmatprep.subr.bf16.mxu0 %v4171_v0 }
  0x72   :  { %3628 = vmatpush3.bf16.msra.mxu0 %v4475_v32 }
  0x73   :  { %3629 = vmatprep.subr.bf16.mxu0 %v4171_v0 }
  0x76   :  { %3631 = vmatpush3.bf16.msra.mxu0 %v4480_v41 }
  0x77   :  { %3632 = vmatprep.subr.bf16.mxu0 %v4171_v0 }
  0x7a   :  { %3634 = vmatpush3.bf16.msra.mxu0 %v4485_v42 }
  0x7b   :  { %3635 = vmatprep.subr.bf16.mxu0 %v4171_v0 }
 0x130   :  { %v536_v30 = vpop.f32.mrb[0].mxu0 }
 0x131   :  { %v4043_v35 = vadd.f32 %v536_v30, %v50_v9  ;;  %v2944_v39 = vpop.f32.mrb[1].mxu0  ;;  %v3642_v9 = vpack.c.bf16 %v692_v56, %v685_v54  ;;  %v699_v30 = vand.u32 4294901760, %v698_v57 }
 0x132   :  { %v712_v39 = vsub.f32 %v4367_v12, %v711_v5  ;;  %v733_v12 = vsub.f32 %v4392_v37, %v732_v17  ;;  %v3708_v37 = vpack.c.bf16 %v662_v29, %v655_v11  ;;  %v4643_v11 = vsub.f32 %v1203_v61, %v1224_v4  ;;  %v1214_v5 = vld [vmem:[#allocation5 + $0xf8] sm:$0xff] }
 0x133   :  { %v540_v45 = vmax.f32 %v4043_v35, 0.0  ;;  %v706_v35 = vand.u32 4294901760, %v705_v58 }
 0x134   :  { %v713_v25 = vand.u32 4294901760, %v712_v39  ;;  %v1216_v39 = vld [vmem:[#allocation5 + $0x108] sm:$0xff] }
 0x135   :  { %v4516_v20 = vand.u32 4294901760, %v540_v45  ;;  %v3645_v24 = vpack.c.bf16 %v706_v35, %v699_v30  ;;  %v1215_v35 = vld [vmem:[#allocation5 + $0x100] sm:$0xff]  ;;  %v1263_v46 = vand.u32 4294901760, %v1216_v39 }
 0x137   :  { %v4520_v22 = vsub.f32 %v540_v45, %v4516_v20  ;;  %v719_v45 = vsub.f32 %v4372_v28, %v718_v7 }
 0x139   :  { %v644_v33 = vand.u32 4294901760, %v4520_v22  ;;  %3048 = vmatmul.mubr.f32.vlgmr.msra.gmra.mrb[0].mxu1 %v4520_v22  ;;  %v720_v26 = vand.u32 4294901760, %v719_v45  ;;  %v1260_v45 = vand.u32 4294901760, %v1215_v35 }
 0x13a   :  { %3685 = vmatpush3.bf16.msra.mxu1 %v4431_v16  ;;  %3082 = vmatprep.mubr.msk.f32.mxu1 %vm4172_vm0, %v4173_v1 }
 0x13b   :  { %v645_v40 = vsub.f32 %v4520_v22, %v644_v33  ;;  %3686 = vmatprep.subr.bf16.mxu1 %v4171_v0  ;;  %v3648_v28 = vpack.c.bf16 %v720_v26, %v713_v25  ;;  %v4685_v17 = vpack.c.bf16 %v1263_v46, %v1260_v45  ;;  %v1218_v25 = vld [vmem:[#allocation5 + $0x118] sm:$0xff] }
 0x13c   :  { %v1269_v27 = vand.u32 4294901760, %v1218_v25 }
 0x13d   :  { %v646_v53 = vand.u32 4294901760, %v645_v40  ;;  %v734_v40 = vand.u32 4294901760, %v733_v12  ;;  %v1317_v12 = vand.u32 4294901760, %v4643_v11 }
 0x13e   :  { %3688 = vmatpush3.bf16.msra.mxu1 %v4440_v15 }
 0x13f   :  { %2978 = vmatmul.mubr.f32.vlgmr.msra.gmra.mrb[2].mxu0 %v646_v53  ;;  %3689 = vmatprep.subr.bf16.mxu1 %v4171_v0  ;;  %v3651_v36 = vpack.c.bf16 %v734_v40, %v727_v34  ;;  %v1318_v40 = vsub.f32 %v4643_v11, %v1317_v12 }
 0x140   :  { %3637 = vmatpush3.bf16.msra.mxu0 %v3636_v48  ;;  %3012 = vmatprep.mubr.msk.f32.mxu0 %vm4172_vm0, %v4173_v1  ;;  %v1251_v48 = vand.u32 4294901760, %v1212_v19 }
 0x141   :  { %3638 = vmatprep.subr.bf16.mxu0 %v4171_v0  ;;  %v1319_v61 = vand.u32 4294901760, %v1318_v40 }
 0x142   :  { %3691 = vmatpush3.bf16.msra.mxu1 %v4450_v10  ;;  %v4665_v54 = vsub.f32 %v1212_v19, %v1251_v48 }
 0x143   :  { %3692 = vmatprep.subr.bf16.mxu1 %v4171_v0 }
 0x144   :  { %3640 = vmatpush3.bf16.msra.mxu0 %v3639_v59  ;;  %v1213_v59 = vld [vmem:[#allocation5 + $0xf0] sm:$0xff] }
 0x145   :  { %3641 = vmatprep.subr.bf16.mxu0 %v4171_v0  ;;  %v1254_v7 = vand.u32 4294901760, %v1213_v59 }
 0x146   :  { %3694 = vmatpush3.bf16.msra.mxu1 %v4458_v13 }
 0x147   :  { %3695 = vmatprep.subr.bf16.mxu1 %v4171_v0 }
 0x148   :  { %3643 = vmatpush3.bf16.msra.mxu0 %v3642_v9  ;;  %v1257_v9 = vand.u32 4294901760, %v1214_v5 }
 0x149   :  { %3644 = vmatprep.subr.bf16.mxu0 %v4171_v0 }
 0x14a   :  { %3697 = vmatpush3.bf16.msra.mxu1 %v4466_v14  ;;  %v4681_v30 = vpack.c.bf16 %v1257_v9, %v1254_v7 }
 0x14b   :  { %3698 = vmatprep.subr.bf16.mxu1 %v4171_v0 }
 0x14c   :  { %3646 = vmatpush3.bf16.msra.mxu0 %v3645_v24  ;;  %v1217_v24 = vld [vmem:[#allocation5 + $0x110] sm:$0xff] }
 0x14d   :  { %3647 = vmatprep.subr.bf16.mxu0 %v4171_v0  ;;  %v1266_v26 = vand.u32 4294901760, %v1217_v24 }
 0x14e   :  { %3700 = vmatpush3.bf16.msra.mxu1 %v4475_v32 }
 0x14f   :  { %3701 = vmatprep.subr.bf16.mxu1 %v4171_v0  ;;  %v4691_v34 = vpack.c.bf16 %v1269_v27, %v1266_v26 }
 0x150   :  { %3649 = vmatpush3.bf16.msra.mxu0 %v3648_v28 }
 0x151   :  { %3650 = vmatprep.subr.bf16.mxu0 %v4171_v0 }
 0x152   :  { %3703 = vmatpush3.bf16.msra.mxu1 %v4480_v41 }
 0x153   :  { %3704 = vmatprep.subr.bf16.mxu1 %v4171_v0 }
 0x154   :  { %3652 = vmatpush3.bf16.msra.mxu0 %v3651_v36 }
 0x155   :  { %3653 = vmatprep.subr.bf16.mxu0 %v4171_v0 }
 0x156   :  { %3706 = vmatpush3.bf16.msra.mxu1 %v4485_v42 }
 0x157   :  { %3707 = vmatprep.subr.bf16.mxu1 %v4171_v0 }
 0x158   :  { %3655 = vmatpush3.bf16.msra.mxu0 %v4489_v55 }
 0x159   :  { %3083 = vmatmul.mubr.f32.vlgmr.msra.gmra.mrb[0].mxu1 %v644_v33  ;;  %3656 = vmatprep.subr.bf16.mxu0 %v4171_v0 }
 0x15a   :  { %3709 = vmatpush3.bf16.msra.mxu1 %v3708_v37  ;;  %3117 = vmatprep.mubr.msk.f32.mxu1 %vm4172_vm0, %v4173_v1  ;;  %v4699_v37 = vsub.f32 %v1213_v59, %v1254_v7 }
 0x15b   :  { %3710 = vmatprep.subr.bf16.mxu1 %v4171_v0 }
 0x15c   :  { %3658 = vmatpush3.bf16.msra.mxu0 %v4491_v60  ;;  %v1210_v60 = vld [vmem:[#allocation5 + $0xd8] sm:$0xff] }
 0x15d   :  { %3755 = vmatprep.subr.bf16.mxu0 %v4171_v0  ;;  %v1245_v44 = vand.u32 4294901760, %v1210_v60 }
 0x15e   :  { %3712 = vmatpush3.bf16.msra.mxu1 %v3711_v43  ;;  %v4701_v43 = vsub.f32 %v1214_v5, %v1257_v9 }
 0x15f   :  { %3013 = vmatmul.mubr.f32.vlgmr.msra.gmra.mrb[2].mxu0 %v4516_v20  ;;  %3713 = vmatprep.subr.bf16.mxu1 %v4171_v0  ;;  %v4661_v50 = vsub.f32 %v1210_v60, %v1245_v44 }
 0x160   :  { %3187 = vmatprep.mubr.msk.f32.mxu0 %vm4172_vm0, %v4173_v1 }
 0x162   :  { %3715 = vmatpush3.bf16.msra.mxu1 %v3714_v31  ;;  %v4703_v31 = vsub.f32 %v1215_v35, %v1260_v45  ;;  %v5207_v35 = vand.u32 4294901760, %v4665_v54 }
 0x163   :  { %3716 = vmatprep.subr.bf16.mxu1 %v4171_v0 }
 0x166   :  { %3718 = vmatpush3.bf16.msra.mxu1 %v3717_v38  ;;  %v4705_v38 = vsub.f32 %v1216_v39, %v1263_v46  ;;  %v1381_v46 = vsub.f32 %v4665_v54, %v5207_v35 }
 0x167   :  { %3719 = vmatprep.subr.bf16.mxu1 %v4171_v0 }
 0x16a   :  { %3721 = vmatpush3.bf16.msra.mxu1 %v3720_v51  ;;  %v4708_v51 = vsub.f32 %v1217_v24, %v1266_v26  ;;  %v5206_v26 = vand.u32 4294901760, %v4699_v37 }
 0x16b   :  { %3722 = vmatprep.subr.bf16.mxu1 %v4171_v0 }
 0x16e   :  { %3724 = vmatpush3.bf16.msra.mxu1 %v3723_v52  ;;  %v4710_v52 = vsub.f32 %v1218_v25, %v1269_v27  ;;  %v1382_v25 = vand.u32 4294901760, %v1381_v46  ;;  %v5205_v27 = vand.u32 4294901760, %v4701_v43 }
 0x16f   :  { %3725 = vmatprep.subr.bf16.mxu1 %v4171_v0 }
 0x172   :  { %3727 = vmatpush3.bf16.msra.mxu1 %v4493_v63  ;;  %v1211_v63 = vld [vmem:[#allocation5 + $0xe0] sm:$0xff] }
 0x173   :  { %3728 = vmatprep.subr.bf16.mxu1 %v4171_v0  ;;  %v1248_v47 = vand.u32 4294901760, %v1211_v63 }
 0x175   :  { %v4663_v53 = vsub.f32 %v1211_v63, %v1248_v47  ;;  %v4676_v58 = vpack.c.bf16 %v1251_v48, %v1248_v47 }
 0x176   :  { %3730 = vmatpush3.bf16.msra.mxu1 %v4495_v2 }
 0x177   :  { %3731 = vmatprep.subr.bf16.mxu1 %v4171_v0  ;;  %v5208_v9 = vand.u32 4294901760, %v4663_v53 }
 0x179   :  { %3118 = vmatmul.mubr.f32.vlgmr.msra.gmra.mrb[0].mxu1 %v4516_v20  ;;  %v1374_v45 = vsub.f32 %v4663_v53, %v5208_v9 }
 0x17a   :  { %3733 = vmatpush3.bf16.msra.mxu1 %v4431_v16  ;;  %3152 = vmatprep.mubr.msk.f32.mxu1 %vm4172_vm0, %v4173_v1  ;;  %v1227_v16 = vand.u32 4294901760, %v1204_v62 }
 0x17b   :  { %3734 = vmatprep.subr.bf16.mxu1 %v4171_v0  ;;  %v1375_v24 = vand.u32 4294901760, %v1374_v45 }
 0x17c   :  { %v4641_v2 = vpack.c.bf16 %v1227_v16, %v1224_v4  ;;  %v4645_v29 = vsub.f32 %v1204_v62, %v1227_v16 }
 0x17d   :  { %v3792_v40 = vpack.c.bf16 %v1382_v25, %v1375_v24 }
 0x17e   :  { %3736 = vmatpush3.bf16.msra.mxu1 %v4440_v15  ;;  %v1206_v15 = vld [vmem:[#allocation5 + $0xb8] sm:$0xff]  ;;  %3757 = vmatpush3.bf16.msra.mxu0 %v4641_v2  ;;  %v1324_v28 = vand.u32 4294901760, %v4645_v29 }
 0x17f   :  { %3737 = vmatprep.subr.bf16.mxu1 %v4171_v0  ;;  %3758 = vmatprep.subr.bf16.mxu0 %v4171_v0 }
 0x180   :  { %v1325_v36 = vsub.f32 %v4645_v29, %v1324_v28 }
 0x182   :  { %3739 = vmatpush3.bf16.msra.mxu1 %v4450_v10  ;;  %v1230_v10 = vand.u32 4294901760, %v1205_v3  ;;  %v1326_v62 = vand.u32 4294901760, %v1325_v36  ;;  %v1388_v36 = vsub.f32 %v4699_v37, %v5206_v26 }
 0x183   :  { %3740 = vmatprep.subr.bf16.mxu1 %v4171_v0 }
 0x184   :  { %v4647_v18 = vsub.f32 %v1205_v3, %v1230_v10  ;;  %v4715_v16 = vpack.c.bf16 %v1326_v62, %v1319_v61  ;;  %v1395_v61 = vsub.f32 %v4701_v43, %v5205_v27  ;;  %v1389_v62 = vand.u32 4294901760, %v1388_v36 }
 0x185   :  { %v3804_v36 = vpack.c.bf16 %v4645_v29, %v4643_v11 }
 0x186   :  { %3742 = vmatpush3.bf16.msra.mxu1 %v4458_v13  ;;  %v1207_v13 = vld [vmem:[#allocation5 + $0xc0] sm:$0xff]  ;;  %v1331_v3 = vand.u32 4294901760, %v4647_v18 }
 0x187   :  { %3743 = vmatprep.subr.bf16.mxu1 %v4171_v0 }
 0x18a   :  { %3745 = vmatpush3.bf16.msra.mxu1 %v4466_v14  ;;  %v1208_v14 = vld [vmem:[#allocation5 + $0xc8] sm:$0xff] }
 0x18b   :  { %3746 = vmatprep.subr.bf16.mxu1 %v4171_v0  ;;  %v1239_v55 = vand.u32 4294901760, %v1208_v14 }
 0x18d   :  { %v4656_v23 = vsub.f32 %v1208_v14, %v1239_v55 }
 0x18e   :  { %3748 = vmatpush3.bf16.msra.mxu1 %v4475_v32  ;;  %v1233_v32 = vand.u32 4294901760, %v1206_v15 }
 0x18f   :  { %3749 = vmatprep.subr.bf16.mxu1 %v4171_v0  ;;  %v5211_v14 = vand.u32 4294901760, %v4656_v23  ;;  %v5223_v29 = vand.u32 4294901760, %v4656_v23 }
 0x190   :  { %v4651_v21 = vsub.f32 %v1206_v15, %v1233_v32  ;;  %v1332_v15 = vsub.f32 %v4647_v18, %v1331_v3 }
 0x192   :  { %3751 = vmatpush3.bf16.msra.mxu1 %v4480_v41  ;;  %v1236_v41 = vand.u32 4294901760, %v1207_v13  ;;  %v5213_v4 = vand.u32 4294901760, %v4651_v21 }
 0x193   :  { %3752 = vmatprep.subr.bf16.mxu1 %v4171_v0 }
 0x194   :  { %v4653_v22 = vsub.f32 %v1207_v13, %v1236_v41  ;;  %v4668_v56 = vpack.c.bf16 %v1239_v55, %v1236_v41 }
 0x196   :  { %3754 = vmatpush3.bf16.msra.mxu1 %v4485_v42  ;;  %v1209_v42 = vld [vmem:[#allocation5 + $0xd0] sm:$0xff]  ;;  %v5212_v13 = vand.u32 4294901760, %v4653_v22  ;;  %v5222_v11 = vand.u32 4294901760, %v4653_v22 }
 0x197   :  { %3899 = vmatprep.subr.bf16.mxu1 %v4171_v0  ;;  %v1242_v33 = vand.u32 4294901760, %v1209_v42 }
 0x198   :  { %v1346_v55 = vsub.f32 %v4653_v22, %v5212_v13 }
 0x199   :  { %3153 = vmatmul.mubr.f32.vlgmr.msra.gmra.mrb[0].mxu1 %v4516_v20  ;;  %v4649_v20 = vpack.c.bf16 %v1233_v32, %v1230_v10  ;;  %v4659_v49 = vsub.f32 %v1209_v42, %v1242_v33  ;;  %v4672_v57 = vpack.c.bf16 %v1245_v44, %v1242_v33  ;;  %v1339_v10 = vsub.f32 %v4651_v21, %v5213_v4 }
 0x19a   :  { %3397 = vmatprep.mubr.msk.f32.mxu1 %vm4172_vm0, %v4173_v1  ;;  %v1333_v32 = vand.u32 4294901760, %v1332_v15  ;;  %v1353_v42 = vsub.f32 %v4656_v23, %v5211_v14  ;;  %v1347_v63 = vand.u32 4294901760, %v1346_v55  ;;  %v5209_v44 = vand.u32 4294901760, %v4661_v50 }
 0x19b   :  { %3760 = vmatpush3.bf16.msra.mxu0 %v4649_v20  ;;  %v1340_v41 = vand.u32 4294901760, %v1339_v10  ;;  %v5210_v33 = vand.u32 4294901760, %v4659_v49  ;;  %v1396_v15 = vand.u32 4294901760, %v1395_v61  ;;  %v5204_v10 = vand.u32 4294901760, %v4703_v31 }
 0x19c   :  { %3761 = vmatprep.subr.bf16.mxu0 %v4171_v0  ;;  %v1354_v19 = vand.u32 4294901760, %v1353_v42  ;;  %v1367_v59 = vsub.f32 %v4661_v50, %v5209_v44  ;;  %v3807_v61 = vpack.c.bf16 %v4651_v21, %v4647_v18  ;;  %v5225_v18 = vand.u32 4294901760, %v4661_v50 }
 0x19d   :  { %v4731_v60 = vpack.c.bf16 %v1340_v41, %v1333_v32  ;;  %v1360_v48 = vsub.f32 %v4659_v49, %v5210_v33  ;;  %v5203_v32 = vand.u32 4294901760, %v4705_v38  ;;  %v3795_v41 = vpack.c.bf16 %v1396_v15, %v1389_v62 }
 0x19e   :  { %v3786_v47 = vpack.c.bf16 %v1354_v19, %v1347_v63  ;;  %v1368_v7 = vand.u32 4294901760, %v1367_v59  ;;  %v1402_v55 = vsub.f32 %v4703_v31, %v5204_v10  ;;  %v5201_v59 = vand.u32 4294901760, %v4710_v52 }
 0x19f   :  { %3763 = vmatpush3.bf16.msra.mxu0 %v4668_v56  ;;  %v1361_v5 = vand.u32 4294901760, %v1360_v48  ;;  %v1409_v42 = vsub.f32 %v4705_v38, %v5203_v32  ;;  %v5202_v48 = vand.u32 4294901760, %v4708_v51  ;;  %v3810_v62 = vpack.c.bf16 %v4656_v23, %v4653_v22 }
 0x1a0   :  { %3764 = vmatprep.subr.bf16.mxu0 %v4171_v0  ;;  %v1403_v63 = vand.u32 4294901760, %v1402_v55  ;;  %v1423_v45 = vsub.f32 %v4710_v52, %v5201_v59  ;;  %v3813_v15 = vpack.c.bf16 %v4661_v50, %v4659_v49  ;;  %v3816_v55 = vpack.c.bf16 %v4665_v54, %v4663_v53 }
 0x1a1   :  { %v3789_v39 = vpack.c.bf16 %v1368_v7, %v1361_v5  ;;  %v1410_v19 = vand.u32 4294901760, %v1409_v42  ;;  %v1416_v7 = vsub.f32 %v4708_v51, %v5202_v48  ;;  %v3819_v42 = vpack.c.bf16 %v4701_v43, %v4699_v37 }
 0x1a2   :  { %v1424_v24 = vand.u32 4294901760, %v1423_v45  ;;  %v3825_v45 = vpack.c.bf16 %v4710_v52, %v4708_v51  ;;  %v5228_v22 = vand.u32 4294901760, %v4699_v37  ;;  %v5229_v23 = vand.u32 4294901760, %v4701_v43  ;;  %v1878_v43 = vld [vmem:[#allocation5 + $0x188] sm:$0xff] }
 0x1a3   :  { %3766 = vmatpush3.bf16.msra.mxu0 %v4672_v57  ;;  %v3798_v5 = vpack.c.bf16 %v1410_v19, %v1403_v63  ;;  %v1417_v46 = vand.u32 4294901760, %v1416_v7  ;;  %v3822_v63 = vpack.c.bf16 %v4705_v38, %v4703_v31  ;;  %v5231_v50 = vand.u32 4294901760, %v4705_v38  ;;  %v1879_v38 = vld [vmem:[#allocation5 + $0x190] sm:$0xff] }
 0x1a4   :  { %3767 = vmatprep.subr.bf16.mxu0 %v4171_v0 }
 0x1a5   :  { %v3801_v25 = vpack.c.bf16 %v1424_v24, %v1417_v46  ;;  %v559_v46 = vsub.s32 1, %v4497_v6 }
 0x1a7   :  { %3769 = vmatpush3.bf16.msra.mxu0 %v4676_v58  ;;  %v560_v24 = vrot.slane %v4503_v8, %v559_v46  ;;  %v1865_v8 = vld [vmem:[#allocation5 + $0x120] sm:$0xff] }
 0x1a8   :  { %3770 = vmatprep.subr.bf16.mxu0 %v4171_v0 }
 0x1ab   :  { %3772 = vmatpush3.bf16.msra.mxu0 %v4681_v30 }
 0x1ac   :  { %3773 = vmatprep.subr.bf16.mxu0 %v4171_v0 }
 0x1af   :  { %3775 = vmatpush3.bf16.msra.mxu0 %v4685_v17 }
 0x1b0   :  { %3776 = vmatprep.subr.bf16.mxu0 %v4171_v0 }
 0x1b3   :  { %3778 = vmatpush3.bf16.msra.mxu0 %v4691_v34 }
 0x1b4   :  { %3779 = vmatprep.subr.bf16.mxu0 %v4171_v0 }
 0x232   :  { %v799_v19 = vpop.f32.mrb[2].mxu0 }
 0x233   :  { %v3014_v7 = vpop.f32.mrb[3].mxu0  ;;  %v4044_v59 = vadd.f32 %v799_v19, %v560_v24 }
 0x26c   :  { %v1198_v48 = vpop.f32.mrb[0].mxu1 }
 0x26d   :  { %v4045_v32 = vadd.f32 %v4044_v59, %v1198_v48  ;;  %v3154_v10 = vpop.f32.mrb[1].mxu1  ;;  %v1871_v59 = vld [vmem:[#allocation5 + $0x150] sm:$0xff] }
 0x26e   :  { %v1870_v10 = vld [vmem:[#allocation5 + $0x148] sm:$0xff] }
 0x26f   :  { %v1202_v27 = vmax.f32 %v4045_v32, 0.0  ;;  %v1901_v48 = vand.u32 4294901760, %v1870_v10 }
 0x271   :  { %v4791_v26 = vand.u32 4294901760, %v1202_v27  ;;  %v4834_v4 = vsub.f32 %v1870_v10, %v1901_v48 }
 0x273   :  { %v4794_v35 = vsub.f32 %v1202_v27, %v4791_v26 }
 0x275   :  { %v1306_v9 = vand.u32 4294901760, %v4794_v35 }
 0x277   :  { %v1307_v7 = vsub.f32 %v4794_v35, %v1306_v9 }
 0x279   :  { %v1308_v44 = vand.u32 4294901760, %v1307_v7  ;;  %v1874_v7 = vld [vmem:[#allocation5 + $0x168] sm:$0xff] }
 0x27b   :  { %3188 = vmatmul.mubr.f32.vlgmr.msra.gmra.mrb[4].mxu0 %v1308_v44  ;;  %v1886_v44 = vand.u32 4294901760, %v1865_v8 }
 0x27c   :  { %3781 = vmatpush3.bf16.msra.mxu0 %v4715_v16  ;;  %3222 = vmatprep.mubr.msk.f32.mxu0 %vm4172_vm0, %v4173_v1  ;;  %v1866_v16 = vld [vmem:[#allocation5 + $0x128] sm:$0xff] }
 0x27d   :  { %3782 = vmatprep.subr.bf16.mxu0 %v4171_v0 }
 0x280   :  { %3784 = vmatpush3.bf16.msra.mxu0 %v4731_v60  ;;  %v1867_v60 = vld [vmem:[#allocation5 + $0x130] sm:$0xff] }
 0x281   :  { %3785 = vmatprep.subr.bf16.mxu0 %v4171_v0  ;;  %v1892_v27 = vand.u32 4294901760, %v1867_v60 }
 0x283   :  { %v4822_v24 = vsub.f32 %v1867_v60, %v1892_v27  ;;  %v1913_v60 = vand.u32 4294901760, %v1874_v7 }
 0x284   :  { %3787 = vmatpush3.bf16.msra.mxu0 %v3786_v47  ;;  %v1889_v47 = vand.u32 4294901760, %v1866_v16 }
 0x285   :  { %3788 = vmatprep.subr.bf16.mxu0 %v4171_v0 }
 0x286   :  { %v4816_v19 = vpack.c.bf16 %v1889_v47, %v1886_v44  ;;  %v4820_v46 = vsub.f32 %v1866_v16, %v1889_v47 }
 0x288   :  { %3790 = vmatpush3.bf16.msra.mxu0 %v3789_v39  ;;  %v1868_v39 = vld [vmem:[#allocation5 + $0x138] sm:$0xff]  ;;  %3901 = vmatpush3.bf16.msra.mxu1 %v4816_v19 }
 0x289   :  { %3791 = vmatprep.subr.bf16.mxu0 %v4171_v0  ;;  %v1895_v32 = vand.u32 4294901760, %v1868_v39  ;;  %3902 = vmatprep.subr.bf16.mxu1 %v4171_v0 }
 0x28b   :  { %v4824_v33 = vpack.c.bf16 %v1895_v32, %v1892_v27  ;;  %v4826_v14 = vsub.f32 %v1868_v39, %v1895_v32 }
 0x28c   :  { %3793 = vmatpush3.bf16.msra.mxu0 %v3792_v40  ;;  %v1869_v40 = vld [vmem:[#allocation5 + $0x140] sm:$0xff] }
 0x28d   :  { %3794 = vmatprep.subr.bf16.mxu0 %v4171_v0  ;;  %3904 = vmatpush3.bf16.msra.mxu1 %v4824_v33 }
 0x28e   :  { %3905 = vmatprep.subr.bf16.mxu1 %v4171_v0 }
 0x290   :  { %3796 = vmatpush3.bf16.msra.mxu0 %v3795_v41  ;;  %v1898_v41 = vand.u32 4294901760, %v1869_v40 }
 0x291   :  { %3797 = vmatprep.subr.bf16.mxu0 %v4171_v0 }
 0x292   :  { %v4828_v13 = vsub.f32 %v1869_v40, %v1898_v41  ;;  %v4844_v40 = vsub.f32 %v1874_v7, %v1913_v60 }
 0x294   :  { %3799 = vmatpush3.bf16.msra.mxu0 %v3798_v5  ;;  %v1872_v5 = vld [vmem:[#allocation5 + $0x158] sm:$0xff] }
 0x295   :  { %3800 = vmatprep.subr.bf16.mxu0 %v4171_v0  ;;  %v1907_v16 = vand.u32 4294901760, %v1872_v5 }
 0x297   :  { %v4840_v39 = vsub.f32 %v1872_v5, %v1907_v16 }
 0x298   :  { %3802 = vmatpush3.bf16.msra.mxu0 %v3801_v25  ;;  %v1873_v25 = vld [vmem:[#allocation5 + $0x160] sm:$0xff] }
 0x299   :  { %3803 = vmatprep.subr.bf16.mxu0 %v4171_v0 }
 0x29b   :  { %3223 = vmatmul.mubr.f32.vlgmr.msra.gmra.mrb[4].mxu0 %v4791_v26 }
 0x29c   :  { %3805 = vmatpush3.bf16.msra.mxu0 %v3804_v36  ;;  %3257 = vmatprep.mubr.msk.f32.mxu0 %vm4172_vm0, %v4173_v1  ;;  %v4818_v36 = vsub.f32 %v1865_v8, %v1886_v44  ;;  %v1904_v8 = vand.u32 4294901760, %v1871_v59  ;;  %v1910_v44 = vand.u32 4294901760, %v1873_v25 }
 0x29d   :  { %3806 = vmatprep.subr.bf16.mxu0 %v4171_v0 }
 0x29e   :  { %v4838_v47 = vsub.f32 %v1871_v59, %v1904_v8  ;;  %v4842_v27 = vsub.f32 %v1873_v25, %v1910_v44  ;;  %v4858_v10 = vpack.c.bf16 %v1907_v16, %v1904_v8 }
 0x2a0   :  { %3808 = vmatpush3.bf16.msra.mxu0 %v3807_v61  ;;  %v4850_v61 = vpack.c.bf16 %v1901_v48, %v1898_v41  ;;  %v1986_v41 = vand.u32 4294901760, %v4820_v46 }
 0x2a1   :  { %3809 = vmatprep.subr.bf16.mxu0 %v4171_v0 }
 0x2a2   :  { %3907 = vmatpush3.bf16.msra.mxu1 %v4850_v61  ;;  %v1987_v5 = vsub.f32 %v4820_v46, %v1986_v41 }
 0x2a3   :  { %3908 = vmatprep.subr.bf16.mxu1 %v4171_v0 }
 0x2a4   :  { %3811 = vmatpush3.bf16.msra.mxu0 %v3810_v62  ;;  %v4866_v62 = vpack.c.bf16 %v1913_v60, %v1910_v44 }
 0x2a5   :  { %3812 = vmatprep.subr.bf16.mxu0 %v4171_v0 }
 0x2a6   :  { %3910 = vmatpush3.bf16.msra.mxu1 %v4858_v10 }
 0x2a7   :  { %3911 = vmatprep.subr.bf16.mxu1 %v4171_v0 }
 0x2a8   :  { %3814 = vmatpush3.bf16.msra.mxu0 %v3813_v15  ;;  %v3852_v15 = vpack.c.bf16 %v1324_v28, %v1317_v12  ;;  %v3858_v12 = vpack.c.bf16 %v5223_v29, %v5222_v11  ;;  %v5224_v28 = vand.u32 4294901760, %v4659_v49  ;;  %v5230_v49 = vand.u32 4294901760, %v4703_v31 }
 0x2a9   :  { %3815 = vmatprep.subr.bf16.mxu0 %v4171_v0  ;;  %v1925_v31 = vand.u32 4294901760, %v1878_v43  ;;  %v2000_v11 = vand.u32 4294901760, %v4826_v14 }
 0x2aa   :  { %3913 = vmatpush3.bf16.msra.mxu1 %v4866_v62 }
 0x2ab   :  { %3914 = vmatprep.subr.bf16.mxu1 %v4171_v0  ;;  %v4990_v16 = vsub.f32 %v1878_v43, %v1925_v31 }
 0x2ac   :  { %3817 = vmatpush3.bf16.msra.mxu0 %v3816_v55  ;;  %v5221_v55 = vand.u32 4294901760, %v4651_v21  ;;  %v3861_v21 = vpack.c.bf16 %v5225_v18, %v5224_v28  ;;  %v2001_v28 = vsub.f32 %v4826_v14, %v2000_v11  ;;  %v2007_v18 = vand.u32 4294901760, %v4828_v13 }
 0x2ad   :  { %3818 = vmatprep.subr.bf16.mxu0 %v4171_v0 }
 0x2b0   :  { %3820 = vmatpush3.bf16.msra.mxu0 %v3819_v42  ;;  %v3855_v42 = vpack.c.bf16 %v5221_v55, %v1331_v3  ;;  %v5226_v3 = vand.u32 4294901760, %v4663_v53  ;;  %v5232_v53 = vand.u32 4294901760, %v4708_v51  ;;  %v1928_v51 = vand.u32 4294901760, %v1879_v38 }
 0x2b1   :  { %3821 = vmatprep.subr.bf16.mxu0 %v4171_v0  ;;  %v1988_v55 = vand.u32 4294901760, %v1987_v5 }
 0x2b2   :  { %v4993_v44 = vsub.f32 %v1879_v38, %v1928_v51 }
 0x2b4   :  { %3823 = vmatpush3.bf16.msra.mxu0 %v3822_v63  ;;  %v3867_v63 = vpack.c.bf16 %v5229_v23, %v5228_v22 }
 0x2b5   :  { %3824 = vmatprep.subr.bf16.mxu0 %v4171_v0 }
 0x2b8   :  { %3826 = vmatpush3.bf16.msra.mxu0 %v3825_v45  ;;  %v3870_v45 = vpack.c.bf16 %v5231_v50, %v5230_v49  ;;  %v2021_v50 = vand.u32 4294901760, %v4838_v47 }
 0x2b9   :  { %3827 = vmatprep.subr.bf16.mxu0 %v4171_v0 }
 0x2bb   :  { %3258 = vmatmul.mubr.f32.vlgmr.msra.gmra.mrb[4].mxu0 %v4794_v35 }
 0x2bc   :  { %3829 = vmatpush3.bf16.msra.mxu0 %v4641_v2  ;;  %3292 = vmatprep.mubr.msk.f32.mxu0 %vm4172_vm0, %v4173_v1 }
 0x2bd   :  { %3830 = vmatprep.subr.bf16.mxu0 %v4171_v0 }
 0x2c0   :  { %3832 = vmatpush3.bf16.msra.mxu0 %v4649_v20 }
 0x2c1   :  { %3833 = vmatprep.subr.bf16.mxu0 %v4171_v0 }
 0x2c4   :  { %3835 = vmatpush3.bf16.msra.mxu0 %v4668_v56 }
 0x2c5   :  { %3836 = vmatprep.subr.bf16.mxu0 %v4171_v0 }
 0x2c8   :  { %3838 = vmatpush3.bf16.msra.mxu0 %v4672_v57 }
 0x2c9   :  { %3839 = vmatprep.subr.bf16.mxu0 %v4171_v0 }
 0x2cc   :  { %3841 = vmatpush3.bf16.msra.mxu0 %v4676_v58 }
 0x2cd   :  { %3842 = vmatprep.subr.bf16.mxu0 %v4171_v0 }
 0x2d0   :  { %3844 = vmatpush3.bf16.msra.mxu0 %v4681_v30 }
 0x2d1   :  { %3845 = vmatprep.subr.bf16.mxu0 %v4171_v0 }
 0x2d4   :  { %3847 = vmatpush3.bf16.msra.mxu0 %v4685_v17 }
 0x2d5   :  { %3848 = vmatprep.subr.bf16.mxu0 %v4171_v0 }
 0x2d8   :  { %3850 = vmatpush3.bf16.msra.mxu0 %v4691_v34 }
 0x2d9   :  { %3851 = vmatprep.subr.bf16.mxu0 %v4171_v0 }
 0x2db   :  { %3293 = vmatmul.mubr.f32.vlgmr.msra.gmra.mrb[4].mxu0 %v1306_v9  ;;  %v5227_v9 = vand.u32 4294901760, %v4665_v54  ;;  %v5233_v54 = vand.u32 4294901760, %v4710_v52 }
 0x2dc   :  { %3853 = vmatpush3.bf16.msra.mxu0 %v3852_v15  ;;  %3327 = vmatprep.mubr.msk.f32.mxu0 %vm4172_vm0, %v4173_v1 }
 0x2dd   :  { %3854 = vmatprep.subr.bf16.mxu0 %v4171_v0  ;;  %v3864_v35 = vpack.c.bf16 %v5227_v9, %v5226_v3  ;;  %v3873_v32 = vpack.c.bf16 %v5233_v54, %v5232_v53  ;;  %v2002_v9 = vand.u32 4294901760, %v2001_v28  ;;  %v2022_v54 = vsub.f32 %v4838_v47, %v2021_v50 }
 0x2de   :  { %v5216_v28 = vand.u32 4294901760, %v4990_v16 }
 0x2e0   :  { %3856 = vmatpush3.bf16.msra.mxu0 %v3855_v42  ;;  %v1993_v42 = vand.u32 4294901760, %v4822_v24 }
 0x2e1   :  { %3857 = vmatprep.subr.bf16.mxu0 %v4171_v0 }
 0x2e4   :  { %3859 = vmatpush3.bf16.msra.mxu0 %v3858_v12  ;;  %v1994_v12 = vsub.f32 %v4822_v24, %v1993_v42 }
 0x2e5   :  { %3860 = vmatprep.subr.bf16.mxu0 %v4171_v0 }
 0x2e6   :  { %v1995_v3 = vand.u32 4294901760, %v1994_v12 }
 0x2e8   :  { %3862 = vmatpush3.bf16.msra.mxu0 %v3861_v21  ;;  %v2014_v21 = vand.u32 4294901760, %v4834_v4  ;;  %v3927_v23 = vpack.c.bf16 %v2002_v9, %v1995_v3 }
 0x2e9   :  { %3863 = vmatprep.subr.bf16.mxu0 %v4171_v0 }
 0x2ea   :  { %v2015_v22 = vsub.f32 %v4834_v4, %v2014_v21 }
 0x2ec   :  { %3865 = vmatpush3.bf16.msra.mxu0 %v3864_v35  ;;  %v2008_v35 = vsub.f32 %v4828_v13, %v2007_v18  ;;  %v2016_v49 = vand.u32 4294901760, %v2015_v22 }
 0x2ed   :  { %3866 = vmatprep.subr.bf16.mxu0 %v4171_v0 }
 0x2f0   :  { %3868 = vmatpush3.bf16.msra.mxu0 %v3867_v63  ;;  %v2009_v63 = vand.u32 4294901760, %v2008_v35  ;;  %v2071_v35 = vsub.f32 %v4990_v16, %v5216_v28 }
 0x2f1   :  { %3869 = vmatprep.subr.bf16.mxu0 %v4171_v0 }
 0x2f2   :  { %v3930_v53 = vpack.c.bf16 %v2016_v49, %v2009_v63  ;;  %v2072_v63 = vand.u32 4294901760, %v2071_v35  ;;  %v5215_v49 = vand.u32 4294901760, %v4993_v44 }
 0x2f4   :  { %3871 = vmatpush3.bf16.msra.mxu0 %v3870_v45  ;;  %v2028_v45 = vand.u32 4294901760, %v4840_v39 }
 0x2f5   :  { %3872 = vmatprep.subr.bf16.mxu0 %v4171_v0 }
 0x2f8   :  { %3874 = vmatpush3.bf16.msra.mxu0 %v3873_v32  ;;  %v2029_v32 = vsub.f32 %v4840_v39, %v2028_v45 }
 0x2f9   :  { %3875 = vmatprep.subr.bf16.mxu0 %v4171_v0 }
 0x2fb   :  { %3328 = vmatmul.mubr.f32.vlgmr.msra.gmra.mrb[4].mxu0 %v4791_v26 }
 0x2fc   :  { %3877 = vmatpush3.bf16.msra.mxu0 %v4641_v2  ;;  %3362 = vmatprep.mubr.msk.f32.mxu0 %vm4172_vm0, %v4173_v1  ;;  %v1875_v2 = vld [vmem:[#allocation5 + $0x170] sm:$0xff] }
 0x2fd   :  { %3878 = vmatprep.subr.bf16.mxu0 %v4171_v0 }
 0x300   :  { %3880 = vmatpush3.bf16.msra.mxu0 %v4649_v20  ;;  %v1876_v20 = vld [vmem:[#allocation5 + $0x178] sm:$0xff] }
 0x301   :  { %3881 = vmatprep.subr.bf16.mxu0 %v4171_v0 }
 0x304   :  { %3883 = vmatpush3.bf16.msra.mxu0 %v4668_v56  ;;  %v1916_v56 = vand.u32 4294901760, %v1875_v2 }
 0x305   :  { %3884 = vmatprep.subr.bf16.mxu0 %v4171_v0 }
 0x306   :  { %v4984_v25 = vsub.f32 %v1875_v2, %v1916_v56  ;;  %v2023_v2 = vand.u32 4294901760, %v2022_v54 }
 0x308   :  { %3886 = vmatpush3.bf16.msra.mxu0 %v4672_v57  ;;  %v1919_v57 = vand.u32 4294901760, %v1876_v20 }
 0x309   :  { %3887 = vmatprep.subr.bf16.mxu0 %v4171_v0 }
 0x30a   :  { %v4966_v37 = vpack.c.bf16 %v1919_v57, %v1916_v56  ;;  %v4986_v7 = vsub.f32 %v1876_v20, %v1919_v57  ;;  %v2030_v20 = vand.u32 4294901760, %v2029_v32  ;;  %v2035_v56 = vand.u32 4294901760, %v4842_v27 }
 0x30b   :  { %v5220_v57 = vand.u32 4294901760, %v4844_v40 }
 0x30c   :  { %3889 = vmatpush3.bf16.msra.mxu0 %v4676_v58  ;;  %v1877_v58 = vld [vmem:[#allocation5 + $0x180] sm:$0xff]  ;;  %3916 = vmatpush3.bf16.msra.mxu1 %v4966_v37  ;;  %v2036_v43 = vsub.f32 %v4842_v27, %v2035_v56 }
 0x30d   :  { %3890 = vmatprep.subr.bf16.mxu0 %v4171_v0  ;;  %3917 = vmatprep.subr.bf16.mxu1 %v4171_v0 }
 0x310   :  { %3892 = vmatpush3.bf16.msra.mxu0 %v4681_v30  ;;  %v1922_v30 = vand.u32 4294901760, %v1877_v58 }
 0x311   :  { %3893 = vmatprep.subr.bf16.mxu0 %v4171_v0 }
 0x312   :  { %v4988_v8 = vsub.f32 %v1877_v58, %v1922_v30  ;;  %v3933_v58 = vpack.c.bf16 %v2030_v20, %v2023_v2  ;;  %v2078_v2 = vsub.f32 %v4993_v44, %v5215_v49 }
 0x314   :  { %3895 = vmatpush3.bf16.msra.mxu0 %v4685_v17  ;;  %v4970_v17 = vpack.c.bf16 %v1925_v31, %v1922_v30  ;;  %v2043_v30 = vsub.f32 %v4844_v40, %v5220_v57  ;;  %v2037_v31 = vand.u32 4294901760, %v2036_v43  ;;  %v5217_v12 = vand.u32 4294901760, %v4988_v8 }
 0x315   :  { %3896 = vmatprep.subr.bf16.mxu0 %v4171_v0  ;;  %v2079_v43 = vand.u32 4294901760, %v2078_v2  ;;  %v3966_v35 = vpack.c.bf16 %v4990_v16, %v4988_v8  ;;  %v5076_v2 = vld [vmem:[%s5199_s2] sm:$0xf]  ;;  %s4174_s2 = smov [#allocation7]  }
 0x316   :  { %3919 = vmatpush3.bf16.msra.mxu1 %v4970_v17  ;;  %v2044_v38 = vand.u32 4294901760, %v2043_v30  ;;  %v2064_v9 = vsub.f32 %v4988_v8, %v5217_v12  ;;  %s2533_s13 = sshll.u32 %s4174_s2, 4  ;;  %s2534_s13 = int_to_ptr.vmem [resolvable:$true] %s2533_s13 }
 0x317   :  { %3920 = vmatprep.subr.bf16.mxu1 %v4171_v0  ;;  %s4139_s14 = scalar_lea.vmem %s2534_s13, 128  ;;  %p4144_p3 = scmp.lt.s32.totalorder %s2534_s13, %s2534_s13 }
 0x318   :  { %3898 = vmatpush3.bf16.msra.mxu0 %v4691_v34  ;;  %v1880_v34 = vld [vmem:[#allocation5 + $0x198] sm:$0xff]  ;;  %v2065_v22 = vand.u32 4294901760, %v2064_v9  ;;  %v3963_v9 = vpack.c.bf16 %v4986_v7, %v4984_v25  ;;  %p4140_p2 = scmp.ne.s32.totalorder %s2534_s13, %s4139_s14  ;;  %p4145_p4 = scmp.lt.s32.totalorder %s4139_s14, %s4139_s14 }
 0x319   :  { %v1931_v52 = vand.u32 4294901760, %v1880_v34 }
 0x31a   :  { %v3942_v32 = vpack.c.bf16 %v2072_v63, %v2065_v22  ;;  %v1221_v63 = vsub.s32 2, %v4497_v6  ;;  %p4146_p5 = por %p4145_p4, %p4144_p3 }
 0x31b   :  { %3363 = vmatmul.mubr.f32.vlgmr.msra.gmra.mrb[4].mxu0 %v4791_v26  ;;  %v1979_v26 = vand.u32 4294901760, %v4818_v36  ;;  %v4976_v48 = vpack.c.bf16 %v1931_v52, %v1928_v51  ;;  %v4995_v60 = vsub.f32 %v1880_v34, %v1931_v52  ;;  %v5219_v34 = vand.u32 4294901760, %v4984_v25 }
 0x31c   :  { %v5218_v51 = vand.u32 4294901760, %v4986_v7  ;;  %v3936_v52 = vpack.c.bf16 %v2044_v38, %v2037_v31  ;;  %v3948_v38 = vpack.c.bf16 %v4820_v46, %v4818_v36  ;;  %v5234_v46 = vand.u32 4294901760, %v4844_v40  ;;  %p4147_p6 = pnand %p4146_p5, %p4140_p2 }
 0x31d   :  { %v1980_v59 = vsub.f32 %v4818_v36, %v1979_v26  ;;  %3922 = vmatpush3.bf16.msra.mxu1 %v4976_v48  ;;  %v5214_v54 = vand.u32 4294901760, %v4995_v60  ;;  %v3969_v22 = vpack.c.bf16 %v4995_v60, %v4993_v44  ;;  %v4002_v36 = vpack.c.bf16 %v2014_v21, %v2007_v18 }
 0x31e   :  { %3923 = vmatprep.subr.bf16.mxu1 %v4171_v0  ;;  %v2057_v5 = vsub.f32 %v4986_v7, %v5218_v51 }
 0x31f   :  { %v1981_v15 = vand.u32 4294901760, %v1980_v59  ;;  %v2050_v59 = vsub.f32 %v4984_v25, %v5219_v34  ;;  %v2085_v20 = vsub.f32 %v4995_v60, %v5214_v54 }
 0x321   :  { %v5000_v29 = vpack.c.bf16 %v1988_v55, %v1981_v15  ;;  %v2051_v15 = vand.u32 4294901760, %v2050_v59  ;;  %v2058_v55 = vand.u32 4294901760, %v2057_v5  ;;  %v2086_v30 = vand.u32 4294901760, %v2085_v20 }
 0x322   :  { %v3951_v59 = vpack.c.bf16 %v4826_v14, %v4822_v24  ;;  %v3954_v5 = vpack.c.bf16 %v4834_v4, %v4828_v13  ;;  %v1222_v20 = vrot.slane %v5076_v2, %v1221_v63  ;;  %v4005_v14 = vpack.c.bf16 %v2028_v45, %v2021_v50 }
 0x323   :  { %v3939_v3 = vpack.c.bf16 %v2058_v55, %v2051_v15  ;;  %v3945_v31 = vpack.c.bf16 %v2086_v30, %v2079_v43  ;;  %v3957_v15 = vpack.c.bf16 %v4840_v39, %v4838_v47  ;;  %v3960_v55 = vpack.c.bf16 %v4844_v40, %v4842_v27 }
 0x324   :  { %v4008_v24 = vpack.c.bf16 %v5234_v46, %v2035_v56  ;;  %v5235_v4 = vand.u32 4294901760, %v4984_v25  ;;  %v5236_v13 = vand.u32 4294901760, %v4986_v7  ;;  %v5237_v47 = vand.u32 4294901760, %v4988_v8 }
 0x325   :  { %v5238_v39 = vand.u32 4294901760, %v4990_v16  ;;  %v5239_v27 = vand.u32 4294901760, %v4993_v44  ;;  %v5240_v40 = vand.u32 4294901760, %v4995_v60 }
 0x3ee   :  { %v1860_v43 = vpop.f32.mrb[4].mxu0 }
 0x3ef   :  { %v4046_v30 = vadd.f32 %v1860_v43, %v1222_v20  ;;  %v3364_v54 = vpop.f32.mrb[5].mxu0 }
 0x3f1   :  { %v1864_v49 = vmax.f32 %v4046_v30, 0.0 }
 0x3f3   :  { %v5079_v28 = vand.u32 4294901760, %v1864_v49 }
 0x3f5   :  { %v1967_v12 = vsub.f32 %v1864_v49, %v5079_v28 }
 0x3f7   :  { %v1968_v51 = vand.u32 4294901760, %v1967_v12 }
 0x3f9   :  { %v1969_v34 = vsub.f32 %v1967_v12, %v1968_v51 }
 0x3fb   :  { %v1970_v57 = vand.u32 4294901760, %v1969_v34 }
 0x3fd   :  { %3398 = vmatmul.mubr.f32.vlgmr.msra.gmra.mrb[2].mxu1 %v1970_v57 }
 0x3fe   :  { %3925 = vmatpush3.bf16.msra.mxu1 %v5000_v29  ;;  %3432 = vmatprep.mubr.msk.f32.mxu1 %vm4172_vm0, %v4173_v1  ;;  %v3996_v29 = vpack.c.bf16 %v1986_v41, %v1979_v26  ;;  %v4011_v26 = vpack.c.bf16 %v5236_v13, %v5235_v4  ;;  %v4014_v41 = vpack.c.bf16 %v5238_v39, %v5237_v47 }
 0x3ff   :  { %3926 = vmatprep.subr.bf16.mxu1 %v4171_v0 }
 0x402   :  { %3928 = vmatpush3.bf16.msra.mxu1 %v3927_v23  ;;  %v3999_v23 = vpack.c.bf16 %v2000_v11, %v1993_v42  ;;  %v4017_v42 = vpack.c.bf16 %v5240_v40, %v5239_v27 }
 0x403   :  { %3929 = vmatprep.subr.bf16.mxu1 %v4171_v0 }
 0x406   :  { %3931 = vmatpush3.bf16.msra.mxu1 %v3930_v53 }
 0x407   :  { %3932 = vmatprep.subr.bf16.mxu1 %v4171_v0 }
 0x40a   :  { %3934 = vmatpush3.bf16.msra.mxu1 %v3933_v58 }
 0x40b   :  { %3935 = vmatprep.subr.bf16.mxu1 %v4171_v0 }
 0x40e   :  { %3937 = vmatpush3.bf16.msra.mxu1 %v3936_v52 }
 0x40f   :  { %3938 = vmatprep.subr.bf16.mxu1 %v4171_v0 }
 0x412   :  { %3940 = vmatpush3.bf16.msra.mxu1 %v3939_v3 }
 0x413   :  { %3941 = vmatprep.subr.bf16.mxu1 %v4171_v0 }
 0x416   :  { %3943 = vmatpush3.bf16.msra.mxu1 %v3942_v32 }
 0x417   :  { %3944 = vmatprep.subr.bf16.mxu1 %v4171_v0 }
 0x41a   :  { %3946 = vmatpush3.bf16.msra.mxu1 %v3945_v31 }
 0x41b   :  { %3947 = vmatprep.subr.bf16.mxu1 %v4171_v0 }
 0x41d   :  { %3433 = vmatmul.mubr.f32.vlgmr.msra.gmra.mrb[2].mxu1 %v5079_v28 }
 0x41e   :  { %3949 = vmatpush3.bf16.msra.mxu1 %v3948_v38  ;;  %3467 = vmatprep.mubr.msk.f32.mxu1 %vm4172_vm0, %v4173_v1 }
 0x41f   :  { %3950 = vmatprep.subr.bf16.mxu1 %v4171_v0 }
 0x422   :  { %3952 = vmatpush3.bf16.msra.mxu1 %v3951_v59 }
 0x423   :  { %3953 = vmatprep.subr.bf16.mxu1 %v4171_v0 }
 0x426   :  { %3955 = vmatpush3.bf16.msra.mxu1 %v3954_v5 }
 0x427   :  { %3956 = vmatprep.subr.bf16.mxu1 %v4171_v0 }
 0x42a   :  { %3958 = vmatpush3.bf16.msra.mxu1 %v3957_v15 }
 0x42b   :  { %3959 = vmatprep.subr.bf16.mxu1 %v4171_v0 }
 0x42e   :  { %3961 = vmatpush3.bf16.msra.mxu1 %v3960_v55 }
 0x42f   :  { %3962 = vmatprep.subr.bf16.mxu1 %v4171_v0 }
 0x432   :  { %3964 = vmatpush3.bf16.msra.mxu1 %v3963_v9 }
 0x433   :  { %3965 = vmatprep.subr.bf16.mxu1 %v4171_v0 }
 0x436   :  { %3967 = vmatpush3.bf16.msra.mxu1 %v3966_v35 }
 0x437   :  { %3968 = vmatprep.subr.bf16.mxu1 %v4171_v0 }
 0x43a   :  { %3970 = vmatpush3.bf16.msra.mxu1 %v3969_v22 }
 0x43b   :  { %3971 = vmatprep.subr.bf16.mxu1 %v4171_v0 }
 0x43d   :  { %3468 = vmatmul.mubr.f32.vlgmr.msra.gmra.mrb[2].mxu1 %v1967_v12 }
 0x43e   :  { %3973 = vmatpush3.bf16.msra.mxu1 %v4816_v19  ;;  %3502 = vmatprep.mubr.msk.f32.mxu1 %vm4172_vm0, %v4173_v1 }
 0x43f   :  { %3974 = vmatprep.subr.bf16.mxu1 %v4171_v0 }
 0x442   :  { %3976 = vmatpush3.bf16.msra.mxu1 %v4824_v33 }
 0x443   :  { %3977 = vmatprep.subr.bf16.mxu1 %v4171_v0 }
 0x446   :  { %3979 = vmatpush3.bf16.msra.mxu1 %v4850_v61 }
 0x447   :  { %3980 = vmatprep.subr.bf16.mxu1 %v4171_v0 }
 0x44a   :  { %3982 = vmatpush3.bf16.msra.mxu1 %v4858_v10 }
 0x44b   :  { %3983 = vmatprep.subr.bf16.mxu1 %v4171_v0 }
 0x44e   :  { %3985 = vmatpush3.bf16.msra.mxu1 %v4866_v62 }
 0x44f   :  { %3986 = vmatprep.subr.bf16.mxu1 %v4171_v0 }
 0x452   :  { %3988 = vmatpush3.bf16.msra.mxu1 %v4966_v37 }
 0x453   :  { %3989 = vmatprep.subr.bf16.mxu1 %v4171_v0 }
 0x456   :  { %3991 = vmatpush3.bf16.msra.mxu1 %v4970_v17 }
 0x457   :  { %3992 = vmatprep.subr.bf16.mxu1 %v4171_v0 }
 0x45a   :  { %3994 = vmatpush3.bf16.msra.mxu1 %v4976_v48 }
 0x45b   :  { %3995 = vmatprep.subr.bf16.mxu1 %v4171_v0 }
 0x45d   :  { %3503 = vmatmul.mubr.f32.vlgmr.msra.gmra.mrb[2].mxu1 %v1968_v51 }
 0x45e   :  { %3997 = vmatpush3.bf16.msra.mxu1 %v3996_v29  ;;  %3537 = vmatprep.mubr.msk.f32.mxu1 %vm4172_vm0, %v4173_v1 }
 0x45f   :  { %3998 = vmatprep.subr.bf16.mxu1 %v4171_v0 }
 0x462   :  { %4000 = vmatpush3.bf16.msra.mxu1 %v3999_v23 }
 0x463   :  { %4001 = vmatprep.subr.bf16.mxu1 %v4171_v0 }
 0x466   :  { %4003 = vmatpush3.bf16.msra.mxu1 %v4002_v36 }
 0x467   :  { %4004 = vmatprep.subr.bf16.mxu1 %v4171_v0 }
 0x46a   :  { %4006 = vmatpush3.bf16.msra.mxu1 %v4005_v14 }
 0x46b   :  { %4007 = vmatprep.subr.bf16.mxu1 %v4171_v0 }
 0x46e   :  { %4009 = vmatpush3.bf16.msra.mxu1 %v4008_v24 }
 0x46f   :  { %4010 = vmatprep.subr.bf16.mxu1 %v4171_v0 }
 0x472   :  { %4012 = vmatpush3.bf16.msra.mxu1 %v4011_v26 }
 0x473   :  { %4013 = vmatprep.subr.bf16.mxu1 %v4171_v0 }
 0x476   :  { %4015 = vmatpush3.bf16.msra.mxu1 %v4014_v41 }
 0x477   :  { %4016 = vmatprep.subr.bf16.mxu1 %v4171_v0 }
 0x47a   :  { %4018 = vmatpush3.bf16.msra.mxu1 %v4017_v42 }
 0x47b   :  { %4019 = vmatprep.subr.bf16.mxu1 %v4171_v0 }
 0x47d   :  { %3538 = vmatmul.mubr.f32.vlgmr.msra.gmra.mrb[2].mxu1 %v5079_v28 }
 0x47e   :  { %4021 = vmatpush3.bf16.msra.mxu1 %v4816_v19  ;;  %3572 = vmatprep.mubr.msk.f32.mxu1 %vm4172_vm0, %v4173_v1  ;;  %v1883_v1 = vsub.s32 3, %v4497_v6 }
 0x47f   :  { %4022 = vmatprep.subr.bf16.mxu1 %v4171_v0 }
 0x482   :  { %4024 = vmatpush3.bf16.msra.mxu1 %v4824_v33  ;;  %v1884_v33 = vrot.slane %v5076_v2, %v1883_v1 }
 0x483   :  { %4025 = vmatprep.subr.bf16.mxu1 %v4171_v0 }
 0x486   :  { %4027 = vmatpush3.bf16.msra.mxu1 %v4850_v61 }
 0x487   :  { %4028 = vmatprep.subr.bf16.mxu1 %v4171_v0 }
 0x48a   :  { %4030 = vmatpush3.bf16.msra.mxu1 %v4858_v10 }
 0x48b   :  { %4031 = vmatprep.subr.bf16.mxu1 %v4171_v0 }
 0x48e   :  { %4033 = vmatpush3.bf16.msra.mxu1 %v4866_v62 }
 0x48f   :  { %4034 = vmatprep.subr.bf16.mxu1 %v4171_v0 }
 0x492   :  { %4036 = vmatpush3.bf16.msra.mxu1 %v4966_v37 }
 0x493   :  { %4037 = vmatprep.subr.bf16.mxu1 %v4171_v0 }
 0x496   :  { %4039 = vmatpush3.bf16.msra.mxu1 %v4970_v17 }
 0x497   :  { %4040 = vmatprep.subr.bf16.mxu1 %v4171_v0 }
 0x49a   :  { %4042 = vmatpush3.bf16.msra.mxu1 %v4976_v48 }
 0x49d   :  { %3573 = vmatmul.mubr.f32.vlgmr.msra.gmra.mrb[2].mxu1 %v5079_v28 }
 0x570   :  { %v2522_v19 = vpop.f32.mrb[2].mxu1 }
 0x571   :  { %v4047_v61 = vadd.f32 %v2522_v19, %v1884_v33  ;;  %v3574_v10 = vpop.f32.mrb[3].mxu1 }
 0x573   :  { %2526 = vst [vmem:[#allocation7] sm:$0xff] %v4047_v61 }
 0x574   :  { %4150 = shalt.err (!%p4147_p6)
}
 0x575   :  { %s4151_s17 = scalar_lea.hbm %s5200_s3, 128 }
 0x576   :  { %p4152_p7 = scmp.ne.s32.totalorder %s5200_s3, %s4151_s17  ;;  %p4155_p8 = scmp.lt.u32.totalorder %s4151_s17, %s5200_s3 }
 0x578   :  { %p4157_p9 = pnand %p4155_p8, %p4152_p7 }
 0x57a   :  { %4160 = shalt.err (!%p4157_p9)
}
 0x57b   :  { %2536 = dma.vmem_to_hbm [thread:$0]  %s2534_s13, 128, %s5200_s3, [#allocation4]  }
 0x57c   :  { %4165 = dma.done.wait [#allocation4], 128  }
 0x57d   :  { %4166 = vsyncadd [#allocation4], 4294967168 }
 0x57e   :  { %2540 = vsyncpa [#allocation3], 1 }
 0x57f   :  { %2541 = vsyncpa [#allocation6], 1 }
 0x580   :  { %2542 = vsyncpa [#allocation4], 1 }

</bundles_post_ra>
